<compile_context>
chip_gen: v5e
topology: v5e:2x2
jax: 0.10.0
libtpu: 0.0.40
codegen_flags: <defaults>
</compile_context>

<pallas_src>
import jax
import jax.numpy as jnp
import numpy as np
from jax import lax
from jax.experimental import pallas as pl
from jax.experimental.pallas import tpu as pltpu


def _round_up(x, m):
    return ((x + m - 1) // m) * m


def _pick_batch_tile(B):
    # BT even keeps the pooled output block a multiple of 128 lanes (HWp = 64 here).
    for bt in (8, 4, 2):
        if B % bt == 0:
            return bt
    return 1


def _make_convblock_kernel(H, W, BT, c_in, c_out, Cpad1, Cpad2,
                           L_seg, pad_left, pool_pad, negative_slope):
    HW = H * W
    N = BT * HW
    pad_right = L_seg - pad_left - HW
    K1, K2 = 9 * Cpad1, 9 * Cpad2
    taps = [(kh - 1, kw - 1) for kh in range(3) for kw in range(3)]
    f32 = jnp.float32

    def kernel(x_ref, w1_ref, b1_ref, w2_ref, b2_ref, sel_ref, o_ref,
               patch_ref, ext1_ref, ext2_ref, pool_ref):
        # Column-validity masks: only the w direction needs masking (the h halo is
        # covered by the zeros baked into each padded image segment every step).
        ww = lax.broadcasted_iota(jnp.int32, (1, HW), 1) % W
        mask_l = ww >= 1            # valid when dw == -1
        mask_r = ww <= W - 2        # valid when dw == +1

        def lrelu(v):
            return jnp.maximum(v, negative_slope * v)

        def conv3x3(img_of, rows, cpad, k, ext_ref, w_ref, b_ref):
            # Stage each image as ONE lane-aligned (cpad, L_seg) store:
            # [128 zero halo | image | zero halo]; zero rows pad channels to cpad.
            for b in range(BT):
                img = img_of(b)                                     # (rows, HW) f32
                if cpad > rows:
                    img = jnp.concatenate(
                        [img, jnp.zeros((cpad - rows, HW), f32)], axis=0)
                seg = jnp.concatenate(
                    [jnp.zeros((cpad, pad_left), f32), img,
                     jnp.zeros((cpad, pad_right), f32)], axis=1)    # (cpad, L_seg)
                ext_ref[:, b * L_seg:(b + 1) * L_seg] = seg
            # im2col: each (tap, image) is one full 8-row, 128-lane-aligned store.
            for t, (dh, dw) in enumerate(taps):
                d = dh * W + dw
                for b in range(BT):
                    off = b * L_seg + pad_left + d
                    col = ext_ref[:, off:off + HW]                  # (cpad, HW) f32
                    if dw == -1:
                        col = jnp.where(mask_l, col, jnp.zeros_like(col))
                    elif dw == 1:
                        col = jnp.where(mask_r, col, jnp.zeros_like(col))
                    patch_ref[t * cpad:(t + 1) * cpad, b * HW:(b + 1) * HW] = col
            # One MXU matmul per conv: (c_out, 9*cpad) @ (9*cpad, BT*H*W), bf16
            # operands, f32 accumulation; bias add + LeakyReLU stay in f32.
            y = jnp.dot(w_ref[...], patch_ref[0:k, :].astype(jnp.bfloat16),
                        preferred_element_type=f32)
            return lrelu(y + b_ref[...])                            # (c_out, N) f32

        y1 = conv3x3(lambda b: x_ref[b], c_in, Cpad1, K1, ext1_ref, w1_ref, b1_ref)
        y2 = conv3x3(lambda b: y1[:, b * HW:(b + 1) * HW],
                     c_out, Cpad2, K2, ext2_ref, w2_ref, b2_ref)

        # 2x2 stride-2 max pool: window max via shifted reads of a staged copy (single
        # aligned store, zero tail included), then gather the even-(h, w) positions
        # with a 0/1 block-diagonal selection matmul -> lane-dense (c_out, BT*Hp*Wp).
        # Out-of-window / cross-image values picked up near segment ends only land on
        # odd-(h, w) positions, which the selection matrix discards.
        pool_ref[...] = jnp.concatenate(
            [y2, jnp.zeros((c_out, pool_pad), f32)], axis=1)
        m = y2
        for d in (1, W, W + 1):
            m = jnp.maximum(m, pool_ref[:, d:d + N])
        pooled = jnp.dot(m.astype(jnp.bfloat16), sel_ref[...],
                         preferred_element_type=f32)
        o_ref[0] = pooled.astype(o_ref.dtype)                       # (c_out, BT*Hp*Wp)

    return kernel


def _pack_conv_weight(w, cpad, dtype):
    """OIHW -> (c_out, 9*cpad), tap-major / channel-minor, channels zero-padded."""
    c_out, c_in = w.shape[0], w.shape[1]
    wt = jnp.transpose(w, (0, 2, 3, 1))                             # (c_out, 3, 3, c_in)
    if cpad > c_in:
        wt = jnp.concatenate(
            [wt, jnp.zeros((c_out, 3, 3, cpad - c_in), wt.dtype)], axis=-1)
    return wt.reshape(c_out, 9 * cpad).astype(dtype)


def _pool_selection_matrix(H, W, BT):
    """(BT*H*W, BT*Hp*Wp) block-diagonal 0/1 matrix gathering even-(h, w) positions."""
    Hp, Wp = H // 2, W // 2
    HW, HWp = H * W, Hp * Wp
    r = np.arange(HW)
    rh, rw = r // W, r % W
    c = np.arange(HWp)
    ch, cw = c // Wp, c % Wp
    blk = ((rh[:, None] == 2 * ch[None, :]) &
           (rw[:, None] == 2 * cw[None, :])).astype(np.float32)
    sel = np.zeros((BT * HW, BT * HWp), np.float32)
    for b in range(BT):
        sel[b * HW:(b + 1) * HW, b * HWp:(b + 1) * HWp] = blk
    return jnp.asarray(sel, dtype=jnp.bfloat16)                     # exact 0/1 in bf16


def conv_block_pallas(x, w1, b1, w2, b2, *, negative_slope=0.01):
    """ConvBlock forward: conv3x3 -> LeakyReLU -> conv3x3 -> LeakyReLU -> maxpool 2x2/2.

    x : (B, c_in, H, W) NCHW, like the PyTorch module.
    w1: (c_out, c_in, 3, 3),  b1: (c_out,)
    w2: (c_out, c_out, 3, 3), b2: (c_out,)
    returns (B, c_out, H//2, W//2) float32.
    """
    B, c_in, H, W = x.shape
    c_out = w1.shape[0]
    assert H % 2 == 0 and W % 2 == 0, "MaxPool2d(2, 2) needs even H and W"
    assert W <= 127, "single-row halo layout assumes W + 1 <= 128"
    HW = H * W
    Hp, Wp = H // 2, W // 2
    HWp = Hp * Wp

    BT = _pick_batch_tile(B)           # batch tile folded into the lane/N dimension
    NT = B // BT
    N = BT * HW

    Cpad1 = _round_up(c_in, 8)         # f32 sublane-tile-aligned im2col rows
    Cpad2 = _round_up(c_out, 8)
    K1, K2 = 9 * Cpad1, 9 * Cpad2

    pad_left = 128                                     # >= W+1 and a lane multiple
    L_seg = _round_up(pad_left + HW + (W + 1), 128)    # per-image padded segment
    pool_pad = 128                                     # >= W+1 tail for pool shifts

    # Free row-major reshape NCHW -> (B, C, H*W); staging/masks/bias in f32, matmul
    # operands bf16 (weights pre-packed, patch cast at the dot), f32 accumulation.
    x_flat = x.reshape(B, c_in, HW).astype(jnp.float32)
    w1_t = _pack_conv_weight(w1, Cpad1, jnp.bfloat16)   # (c_out, 9*Cpad1)
    w2_t = _pack_conv_weight(w2, Cpad2, jnp.bfloat16)   # (c_out, 9*Cpad2)
    b1_c = b1.reshape(c_out, 1).astype(jnp.float32)
    b2_c = b2.reshape(c_out, 1).astype(jnp.float32)
    sel = _pool_selection_matrix(H, W, BT)              # (N, BT*HWp) bf16 constant

    kernel = _make_convblock_kernel(H, W, BT, c_in, c_out, Cpad1, Cpad2,
                                    L_seg, pad_left, pool_pad, negative_slope)

    flops = 2 * B * HW * c_out * (K1 + K2) + 2 * B * HW * HWp * c_out * BT
    bytes_accessed = (x_flat.size * 4 + w1_t.size * 2 + w2_t.size * 2 +
                      b1_c.size * 4 + b2_c.size * 4 + sel.size * 2 +
                      B * c_out * HWp * 4)

    out = pl.pallas_call(
        kernel,
        out_shape=jax.ShapeDtypeStruct((NT, c_out, BT * HWp), jnp.float32),
        grid_spec=pltpu.PrefetchScalarGridSpec(
            num_scalar_prefetch=0,
            grid=(NT,),
            in_specs=[
                pl.BlockSpec((BT, c_in, HW), lambda g: (g, 0, 0)),   # x batch tile
                pl.BlockSpec((c_out, K1), lambda g: (0, 0)),         # w1 (im2col layout)
                pl.BlockSpec((c_out, 1), lambda g: (0, 0)),          # b1
                pl.BlockSpec((c_out, K2), lambda g: (0, 0)),         # w2
                pl.BlockSpec((c_out, 1), lambda g: (0, 0)),          # b2
                pl.BlockSpec((N, BT * HWp), lambda g: (0, 0)),       # pool gather matrix
            ],
            out_specs=pl.BlockSpec((1, c_out, BT * HWp), lambda g: (g, 0, 0)),
            scratch_shapes=[
                pltpu.VMEM((max(K1, K2), N), jnp.float32),       # shared im2col patch
                pltpu.VMEM((Cpad1, BT * L_seg), jnp.float32),    # padded stage, conv1
                pltpu.VMEM((Cpad2, BT * L_seg), jnp.float32),    # padded stage, conv2
                pltpu.VMEM((c_out, N + pool_pad), jnp.float32),  # pool stage
            ],
        ),
        compiler_params=pltpu.CompilerParams(
            dimension_semantics=("parallel",)),
        cost_estimate=pl.CostEstimate(flops=flops, transcendentals=0,
                                      bytes_accessed=bytes_accessed),
    )(x_flat, w1_t, b1_c, w2_t, b2_c, sel)

    # (NT, c_out, BT*Hp*Wp) -> (B, c_out, Hp, Wp): a tiny transpose of the already
    # pooled output; keeps the in-kernel writeback lane-dense.
    out = out.reshape(NT, c_out, BT, Hp, Wp)
    out = jnp.transpose(out, (0, 2, 1, 3, 4)).reshape(B, c_out, Hp, Wp)
    return out


def _reference(x, w1, b1, w2, b2, negative_slope=0.01):
    """Pure-JAX (f32) reference for validation."""
    def conv(v, w, b):
        y = lax.conv_general_dilated(
            v, w.astype(jnp.float32), window_strides=(1, 1),
            padding=((1, 1), (1, 1)),
            dimension_numbers=("NCHW", "OIHW", "NCHW"))
        return y + b.reshape(1, -1, 1, 1).astype(jnp.float32)

    def lrelu(v):
        return jnp.where(v >= 0, v, negative_slope * v)

    y = lrelu(conv(x.astype(jnp.float32), w1, b1))
    y = lrelu(conv(y, w2, b2))
    y = lax.reduce_window(y, -jnp.inf, lax.max,
                          (1, 1, 2, 2), (1, 1, 2, 2), "VALID")
    return y


if __name__ == "__main__":
    key = jax.random.PRNGKey(0)
    B, Cin, Cout, H, W = 2, 4, 8, 16, 16

    k1, k2, k3, k4, k5 = jax.random.split(key, 5)
    x = jax.random.normal(k1, (B, Cin, H, W), jnp.float32)
    w1 = 0.1 * jax.random.normal(k2, (Cout, Cin, 3, 3), jnp.float32)
    b1 = 0.1 * jax.random.normal(k3, (Cout,), jnp.float32)
    w2 = 0.1 * jax.random.normal(k4, (Cout, Cout, 3, 3), jnp.float32)
    b2 = 0.1 * jax.random.normal(k5, (Cout,), jnp.float32)

    # bf16-round the matmul operands once so the kernel and the f32 reference consume
    # identical values; only in-kernel (bf16 matmul / pooled-gather) rounding remains.
    x_bf = x.astype(jnp.bfloat16)
    w1_bf = w1.astype(jnp.bfloat16)
    w2_bf = w2.astype(jnp.bfloat16)

    fwd = jax.jit(conv_block_pallas)   # weight packing / sel matrix constant-folded
    out = jax.block_until_ready(fwd(x_bf, w1_bf, b1, w2_bf, b2))

    ref = _reference(x_bf, w1_bf, b1, w2_bf, b2)
    np.testing.assert_allclose(np.asarray(out), np.asarray(ref), rtol=1e-2, atol=1e-2)

    print("KERNEL_OK")
</pallas_src>

<mosaic_0001>
module attributes {stable_mosaic.version = 11 : i64} {
  func.func @kernel(%arg0: i32, %arg1: memref<2x4x256xf32, #tpu.memory_space<vmem>>, %arg2: memref<8x72xbf16, #tpu.memory_space<vmem>>, %arg3: memref<8x1xf32, #tpu.memory_space<vmem>>, %arg4: memref<8x72xbf16, #tpu.memory_space<vmem>>, %arg5: memref<8x1xf32, #tpu.memory_space<vmem>>, %arg6: memref<512x128xbf16, #tpu.memory_space<vmem>>, %arg7: memref<1x8x128xf32, #tpu.memory_space<vmem>>, %arg8: memref<72x512xf32, #tpu.memory_space<vmem>>, %arg9: memref<8x1024xf32, #tpu.memory_space<vmem>>, %arg10: memref<8x1024xf32, #tpu.memory_space<vmem>>, %arg11: memref<8x640xf32, #tpu.memory_space<vmem>>) attributes {dimension_semantics = [#tpu.dimension_semantics<parallel>], iteration_bounds = array<i64: 1>, scalar_prefetch = 0 : i64, scratch_operands = 4 : i64, tpu.core_type = #tpu.core_type<tc>, window_params = [{transform_indices = @transform_0, window_bounds = array<i64: 2, 4, 256>}, {pipeline_mode = #tpu.pipeline_mode<synchronous>, transform_indices = @transform_1, window_bounds = array<i64: 8, 72>}, {pipeline_mode = #tpu.pipeline_mode<synchronous>, transform_indices = @transform_2, window_bounds = array<i64: 8, 1>}, {pipeline_mode = #tpu.pipeline_mode<synchronous>, transform_indices = @transform_3, window_bounds = array<i64: 8, 72>}, {pipeline_mode = #tpu.pipeline_mode<synchronous>, transform_indices = @transform_4, window_bounds = array<i64: 8, 1>}, {pipeline_mode = #tpu.pipeline_mode<synchronous>, transform_indices = @transform_5, window_bounds = array<i64: 512, 128>}, {transform_indices = @transform_6, window_bounds = array<i64: 1, 8, 128>}]} {
    %0 = tpu.iota {dimensions = array<i32: 1>} : vector<1x256xi32>
    %c16_i32 = arith.constant 16 : i32
    %c0_i32 = arith.constant 0 : i32
    %1 = arith.cmpi eq, %c16_i32, %c0_i32 : i32
    %c1_i32 = arith.constant 1 : i32
    %2 = arith.select %1, %c1_i32, %c16_i32 : i32
    %3 = vector.broadcast %2 : i32 to vector<1x256xi32>
    %4 = arith.remsi %0, %3 : vector<1x256xi32>
    %c0_i32_0 = arith.constant 0 : i32
    %5 = vector.broadcast %c0_i32_0 : i32 to vector<1x256xi32>
    %6 = arith.cmpi ne, %4, %5 : vector<1x256xi32>
    %c0_i32_1 = arith.constant 0 : i32
    %7 = vector.broadcast %c0_i32_1 : i32 to vector<1x256xi32>
    %8 = arith.cmpi slt, %4, %7 : vector<1x256xi32>
    %c0_i32_2 = arith.constant 0 : i32
    %9 = arith.cmpi slt, %2, %c0_i32_2 : i32
    %10 = vector.broadcast %9 : i1 to vector<1x256xi1>
    %11 = vector.broadcast %10 : vector<1x256xi1> to vector<1x256xi1>
    %12 = arith.xori %8, %11 : vector<1x256xi1>
    %13 = arith.andi %12, %6 : vector<1x256xi1>
    %14 = vector.broadcast %2 : i32 to vector<1x256xi32>
    %15 = arith.addi %4, %14 : vector<1x256xi32>
    %16 = arith.select %13, %15, %4 : vector<1x256xi1>, vector<1x256xi32>
    %c1_i32_3 = arith.constant 1 : i32
    %17 = vector.broadcast %c1_i32_3 : i32 to vector<1x256xi32>
    %18 = arith.cmpi sge, %16, %17 : vector<1x256xi32>
    %c14_i32 = arith.constant 14 : i32
    %19 = vector.broadcast %c14_i32 : i32 to vector<1x256xi32>
    %20 = arith.cmpi sle, %16, %19 : vector<1x256xi32>
    %c0 = arith.constant 0 : index
    %c0_4 = arith.constant 0 : index
    %c0_5 = arith.constant 0 : index
    %21 = vector.load %arg1[%c0, %c0_4, %c0_5] : memref<2x4x256xf32, #tpu.memory_space<vmem>>, vector<1x4x256xf32>
    %22 = vector.shape_cast %21 : vector<1x4x256xf32> to vector<4x256xf32>
    %cst = arith.constant 0.000000e+00 : f32
    %23 = vector.broadcast %cst : f32 to vector<4x256xf32>
    %24 = tpu.concatenate %22, %23 in 0 : vector<4x256xf32>, vector<4x256xf32> -> vector<8x256xf32>
    %cst_6 = arith.constant 0.000000e+00 : f32
    %25 = vector.broadcast %cst_6 : f32 to vector<8x128xf32>
    %cst_7 = arith.constant 0.000000e+00 : f32
    %26 = vector.broadcast %cst_7 : f32 to vector<8x128xf32>
    %27 = tpu.concatenate %25, %24, %26 in 1 : vector<8x128xf32>, vector<8x256xf32>, vector<8x128xf32> -> vector<8x512xf32>
    %c0_8 = arith.constant 0 : index
    %c0_9 = arith.constant 0 : index
    %28 = vector.load %arg9[%c0_8, %c0_9] : memref<8x1024xf32, #tpu.memory_space<vmem>>, vector<8x512xf32>
    tpu.vector_store %arg9[%c0_8, %c0_9], %27 {strides = array<i32>} : memref<8x1024xf32, #tpu.memory_space<vmem>>, vector<8x512xf32>,
    %c1 = arith.constant 1 : index
    %c0_10 = arith.constant 0 : index
    %c0_11 = arith.constant 0 : index
    %29 = vector.load %arg1[%c1, %c0_10, %c0_11] : memref<2x4x256xf32, #tpu.memory_space<vmem>>, vector<1x4x256xf32>
    %30 = vector.shape_cast %29 : vector<1x4x256xf32> to vector<4x256xf32>
    %cst_12 = arith.constant 0.000000e+00 : f32
    %31 = vector.broadcast %cst_12 : f32 to vector<4x256xf32>
    %32 = tpu.concatenate %30, %31 in 0 : vector<4x256xf32>, vector<4x256xf32> -> vector<8x256xf32>
    %cst_13 = arith.constant 0.000000e+00 : f32
    %33 = vector.broadcast %cst_13 : f32 to vector<8x128xf32>
    %cst_14 = arith.constant 0.000000e+00 : f32
    %34 = vector.broadcast %cst_14 : f32 to vector<8x128xf32>
    %35 = tpu.concatenate %33, %32, %34 in 1 : vector<8x128xf32>, vector<8x256xf32>, vector<8x128xf32> -> vector<8x512xf32>
    %c0_15 = arith.constant 0 : index
    %c512 = arith.constant 512 : index
    %36 = vector.load %arg9[%c0_15, %c512] : memref<8x1024xf32, #tpu.memory_space<vmem>>, vector<8x512xf32>
    tpu.vector_store %arg9[%c0_15, %c512], %35 {strides = array<i32>} : memref<8x1024xf32, #tpu.memory_space<vmem>>, vector<8x512xf32>,
    %c0_16 = arith.constant 0 : index
    %c111 = arith.constant 111 : index
    %37 = vector.load %arg9[%c0_16, %c111] : memref<8x1024xf32, #tpu.memory_space<vmem>>, vector<8x256xf32>
    %cst_17 = arith.constant 0.000000e+00 : f32
    %38 = vector.broadcast %cst_17 : f32 to vector<8x256xf32>
    %39 = vector.shape_cast %18 : vector<1x256xi1> to vector<1x256xi1>
    %40 = vector.broadcast %39 : vector<1x256xi1> to vector<8x256xi1>
    %41 = arith.select %40, %37, %38 : vector<8x256xi1>, vector<8x256xf32>
    %c0_18 = arith.constant 0 : index
    %c0_19 = arith.constant 0 : index
    %42 = vector.load %arg8[%c0_18, %c0_19] : memref<72x512xf32, #tpu.memory_space<vmem>>, vector<8x256xf32>
    tpu.vector_store %arg8[%c0_18, %c0_19], %41 {strides = array<i32>} : memref<72x512xf32, #tpu.memory_space<vmem>>, vector<8x256xf32>,
    %c0_20 = arith.constant 0 : index
    %c623 = arith.constant 623 : index
    %43 = vector.load %arg9[%c0_20, %c623] : memref<8x1024xf32, #tpu.memory_space<vmem>>, vector<8x256xf32>
    %cst_21 = arith.constant 0.000000e+00 : f32
    %44 = vector.broadcast %cst_21 : f32 to vector<8x256xf32>
    %45 = vector.shape_cast %18 : vector<1x256xi1> to vector<1x256xi1>
    %46 = vector.broadcast %45 : vector<1x256xi1> to vector<8x256xi1>
    %47 = arith.select %46, %43, %44 : vector<8x256xi1>, vector<8x256xf32>
    %c0_22 = arith.constant 0 : index
    %c256 = arith.constant 256 : index
    %48 = vector.load %arg8[%c0_22, %c256] : memref<72x512xf32, #tpu.memory_space<vmem>>, vector<8x256xf32>
    tpu.vector_store %arg8[%c0_22, %c256], %47 {strides = array<i32>} : memref<72x512xf32, #tpu.memory_space<vmem>>, vector<8x256xf32>,
    %c0_23 = arith.constant 0 : index
    %c112 = arith.constant 112 : index
    %49 = vector.load %arg9[%c0_23, %c112] : memref<8x1024xf32, #tpu.memory_space<vmem>>, vector<8x256xf32>
    %c8 = arith.constant 8 : index
    %c0_24 = arith.constant 0 : index
    %50 = vector.load %arg8[%c8, %c0_24] : memref<72x512xf32, #tpu.memory_space<vmem>>, vector<8x256xf32>
    tpu.vector_store %arg8[%c8, %c0_24], %49 {strides = array<i32>} : memref<72x512xf32, #tpu.memory_space<vmem>>, vector<8x256xf32>,
    %c0_25 = arith.constant 0 : index
    %c624 = arith.constant 624 : index
    %51 = vector.load %arg9[%c0_25, %c624] : memref<8x1024xf32, #tpu.memory_space<vmem>>, vector<8x256xf32>
    %c8_26 = arith.constant 8 : index
    %c256_27 = arith.constant 256 : index
    %52 = vector.load %arg8[%c8_26, %c256_27] : memref<72x512xf32, #tpu.memory_space<vmem>>, vector<8x256xf32>
    tpu.vector_store %arg8[%c8_26, %c256_27], %51 {strides = array<i32>} : memref<72x512xf32, #tpu.memory_space<vmem>>, vector<8x256xf32>,
    %c0_28 = arith.constant 0 : index
    %c113 = arith.constant 113 : index
    %53 = vector.load %arg9[%c0_28, %c113] : memref<8x1024xf32, #tpu.memory_space<vmem>>, vector<8x256xf32>
    %cst_29 = arith.constant 0.000000e+00 : f32
    %54 = vector.broadcast %cst_29 : f32 to vector<8x256xf32>
    %55 = vector.shape_cast %20 : vector<1x256xi1> to vector<1x256xi1>
    %56 = vector.broadcast %55 : vector<1x256xi1> to vector<8x256xi1>
    %57 = arith.select %56, %53, %54 : vector<8x256xi1>, vector<8x256xf32>
    %c16 = arith.constant 16 : index
    %c0_30 = arith.constant 0 : index
    %58 = vector.load %arg8[%c16, %c0_30] : memref<72x512xf32, #tpu.memory_space<vmem>>, vector<8x256xf32>
    tpu.vector_store %arg8[%c16, %c0_30], %57 {strides = array<i32>} : memref<72x512xf32, #tpu.memory_space<vmem>>, vector<8x256xf32>,
    %c0_31 = arith.constant 0 : index
    %c625 = arith.constant 625 : index
    %59 = vector.load %arg9[%c0_31, %c625] : memref<8x1024xf32, #tpu.memory_space<vmem>>, vector<8x256xf32>
    %cst_32 = arith.constant 0.000000e+00 : f32
    %60 = vector.broadcast %cst_32 : f32 to vector<8x256xf32>
    %61 = vector.shape_cast %20 : vector<1x256xi1> to vector<1x256xi1>
    %62 = vector.broadcast %61 : vector<1x256xi1> to vector<8x256xi1>
    %63 = arith.select %62, %59, %60 : vector<8x256xi1>, vector<8x256xf32>
    %c16_33 = arith.constant 16 : index
    %c256_34 = arith.constant 256 : index
    %64 = vector.load %arg8[%c16_33, %c256_34] : memref<72x512xf32, #tpu.memory_space<vmem>>, vector<8x256xf32>
    tpu.vector_store %arg8[%c16_33, %c256_34], %63 {strides = array<i32>} : memref<72x512xf32, #tpu.memory_space<vmem>>, vector<8x256xf32>,
    %c0_35 = arith.constant 0 : index
    %c127 = arith.constant 127 : index
    %65 = vector.load %arg9[%c0_35, %c127] : memref<8x1024xf32, #tpu.memory_space<vmem>>, vector<8x256xf32>
    %cst_36 = arith.constant 0.000000e+00 : f32
    %66 = vector.broadcast %cst_36 : f32 to vector<8x256xf32>
    %67 = vector.shape_cast %18 : vector<1x256xi1> to vector<1x256xi1>
    %68 = vector.broadcast %67 : vector<1x256xi1> to vector<8x256xi1>
    %69 = arith.select %68, %65, %66 : vector<8x256xi1>, vector<8x256xf32>
    %c24 = arith.constant 24 : index
    %c0_37 = arith.constant 0 : index
    %70 = vector.load %arg8[%c24, %c0_37] : memref<72x512xf32, #tpu.memory_space<vmem>>, vector<8x256xf32>
    tpu.vector_store %arg8[%c24, %c0_37], %69 {strides = array<i32>} : memref<72x512xf32, #tpu.memory_space<vmem>>, vector<8x256xf32>,
    %c0_38 = arith.constant 0 : index
    %c639 = arith.constant 639 : index
    %71 = vector.load %arg9[%c0_38, %c639] : memref<8x1024xf32, #tpu.memory_space<vmem>>, vector<8x256xf32>
    %cst_39 = arith.constant 0.000000e+00 : f32
    %72 = vector.broadcast %cst_39 : f32 to vector<8x256xf32>
    %73 = vector.shape_cast %18 : vector<1x256xi1> to vector<1x256xi1>
    %74 = vector.broadcast %73 : vector<1x256xi1> to vector<8x256xi1>
    %75 = arith.select %74, %71, %72 : vector<8x256xi1>, vector<8x256xf32>
    %c24_40 = arith.constant 24 : index
    %c256_41 = arith.constant 256 : index
    %76 = vector.load %arg8[%c24_40, %c256_41] : memref<72x512xf32, #tpu.memory_space<vmem>>, vector<8x256xf32>
    tpu.vector_store %arg8[%c24_40, %c256_41], %75 {strides = array<i32>} : memref<72x512xf32, #tpu.memory_space<vmem>>, vector<8x256xf32>,
    %c0_42 = arith.constant 0 : index
    %c128 = arith.constant 128 : index
    %77 = vector.load %arg9[%c0_42, %c128] : memref<8x1024xf32, #tpu.memory_space<vmem>>, vector<8x256xf32>
    %c32 = arith.constant 32 : index
    %c0_43 = arith.constant 0 : index
    %78 = vector.load %arg8[%c32, %c0_43] : memref<72x512xf32, #tpu.memory_space<vmem>>, vector<8x256xf32>
    tpu.vector_store %arg8[%c32, %c0_43], %77 {strides = array<i32>} : memref<72x512xf32, #tpu.memory_space<vmem>>, vector<8x256xf32>,
    %c0_44 = arith.constant 0 : index
    %c640 = arith.constant 640 : index
    %79 = vector.load %arg9[%c0_44, %c640] : memref<8x1024xf32, #tpu.memory_space<vmem>>, vector<8x256xf32>
    %c32_45 = arith.constant 32 : index
    %c256_46 = arith.constant 256 : index
    %80 = vector.load %arg8[%c32_45, %c256_46] : memref<72x512xf32, #tpu.memory_space<vmem>>, vector<8x256xf32>
    tpu.vector_store %arg8[%c32_45, %c256_46], %79 {strides = array<i32>} : memref<72x512xf32, #tpu.memory_space<vmem>>, vector<8x256xf32>,
    %c0_47 = arith.constant 0 : index
    %c129 = arith.constant 129 : index
    %81 = vector.load %arg9[%c0_47, %c129] : memref<8x1024xf32, #tpu.memory_space<vmem>>, vector<8x256xf32>
    %cst_48 = arith.constant 0.000000e+00 : f32
    %82 = vector.broadcast %cst_48 : f32 to vector<8x256xf32>
    %83 = vector.shape_cast %20 : vector<1x256xi1> to vector<1x256xi1>
    %84 = vector.broadcast %83 : vector<1x256xi1> to vector<8x256xi1>
    %85 = arith.select %84, %81, %82 : vector<8x256xi1>, vector<8x256xf32>
    %c40 = arith.constant 40 : index
    %c0_49 = arith.constant 0 : index
    %86 = vector.load %arg8[%c40, %c0_49] : memref<72x512xf32, #tpu.memory_space<vmem>>, vector<8x256xf32>
    tpu.vector_store %arg8[%c40, %c0_49], %85 {strides = array<i32>} : memref<72x512xf32, #tpu.memory_space<vmem>>, vector<8x256xf32>,
    %c0_50 = arith.constant 0 : index
    %c641 = arith.constant 641 : index
    %87 = vector.load %arg9[%c0_50, %c641] : memref<8x1024xf32, #tpu.memory_space<vmem>>, vector<8x256xf32>
    %cst_51 = arith.constant 0.000000e+00 : f32
    %88 = vector.broadcast %cst_51 : f32 to vector<8x256xf32>
    %89 = vector.shape_cast %20 : vector<1x256xi1> to vector<1x256xi1>
    %90 = vector.broadcast %89 : vector<1x256xi1> to vector<8x256xi1>
    %91 = arith.select %90, %87, %88 : vector<8x256xi1>, vector<8x256xf32>
    %c40_52 = arith.constant 40 : index
    %c256_53 = arith.constant 256 : index
    %92 = vector.load %arg8[%c40_52, %c256_53] : memref<72x512xf32, #tpu.memory_space<vmem>>, vector<8x256xf32>
    tpu.vector_store %arg8[%c40_52, %c256_53], %91 {strides = array<i32>} : memref<72x512xf32, #tpu.memory_space<vmem>>, vector<8x256xf32>,
    %c0_54 = arith.constant 0 : index
    %c143 = arith.constant 143 : index
    %93 = vector.load %arg9[%c0_54, %c143] : memref<8x1024xf32, #tpu.memory_space<vmem>>, vector<8x256xf32>
    %cst_55 = arith.constant 0.000000e+00 : f32
    %94 = vector.broadcast %cst_55 : f32 to vector<8x256xf32>
    %95 = vector.shape_cast %18 : vector<1x256xi1> to vector<1x256xi1>
    %96 = vector.broadcast %95 : vector<1x256xi1> to vector<8x256xi1>
    %97 = arith.select %96, %93, %94 : vector<8x256xi1>, vector<8x256xf32>
    %c48 = arith.constant 48 : index
    %c0_56 = arith.constant 0 : index
    %98 = vector.load %arg8[%c48, %c0_56] : memref<72x512xf32, #tpu.memory_space<vmem>>, vector<8x256xf32>
    tpu.vector_store %arg8[%c48, %c0_56], %97 {strides = array<i32>} : memref<72x512xf32, #tpu.memory_space<vmem>>, vector<8x256xf32>,
    %c0_57 = arith.constant 0 : index
    %c655 = arith.constant 655 : index
    %99 = vector.load %arg9[%c0_57, %c655] : memref<8x1024xf32, #tpu.memory_space<vmem>>, vector<8x256xf32>
    %cst_58 = arith.constant 0.000000e+00 : f32
    %100 = vector.broadcast %cst_58 : f32 to vector<8x256xf32>
    %101 = vector.shape_cast %18 : vector<1x256xi1> to vector<1x256xi1>
    %102 = vector.broadcast %101 : vector<1x256xi1> to vector<8x256xi1>
    %103 = arith.select %102, %99, %100 : vector<8x256xi1>, vector<8x256xf32>
    %c48_59 = arith.constant 48 : index
    %c256_60 = arith.constant 256 : index
    %104 = vector.load %arg8[%c48_59, %c256_60] : memref<72x512xf32, #tpu.memory_space<vmem>>, vector<8x256xf32>
    tpu.vector_store %arg8[%c48_59, %c256_60], %103 {strides = array<i32>} : memref<72x512xf32, #tpu.memory_space<vmem>>, vector<8x256xf32>,
    %c0_61 = arith.constant 0 : index
    %c144 = arith.constant 144 : index
    %105 = vector.load %arg9[%c0_61, %c144] : memref<8x1024xf32, #tpu.memory_space<vmem>>, vector<8x256xf32>
    %c56 = arith.constant 56 : index
    %c0_62 = arith.constant 0 : index
    %106 = vector.load %arg8[%c56, %c0_62] : memref<72x512xf32, #tpu.memory_space<vmem>>, vector<8x256xf32>
    tpu.vector_store %arg8[%c56, %c0_62], %105 {strides = array<i32>} : memref<72x512xf32, #tpu.memory_space<vmem>>, vector<8x256xf32>,
    %c0_63 = arith.constant 0 : index
    %c656 = arith.constant 656 : index
    %107 = vector.load %arg9[%c0_63, %c656] : memref<8x1024xf32, #tpu.memory_space<vmem>>, vector<8x256xf32>
    %c56_64 = arith.constant 56 : index
    %c256_65 = arith.constant 256 : index
    %108 = vector.load %arg8[%c56_64, %c256_65] : memref<72x512xf32, #tpu.memory_space<vmem>>, vector<8x256xf32>
    tpu.vector_store %arg8[%c56_64, %c256_65], %107 {strides = array<i32>} : memref<72x512xf32, #tpu.memory_space<vmem>>, vector<8x256xf32>,
    %c0_66 = arith.constant 0 : index
    %c145 = arith.constant 145 : index
    %109 = vector.load %arg9[%c0_66, %c145] : memref<8x1024xf32, #tpu.memory_space<vmem>>, vector<8x256xf32>
    %cst_67 = arith.constant 0.000000e+00 : f32
    %110 = vector.broadcast %cst_67 : f32 to vector<8x256xf32>
    %111 = vector.shape_cast %20 : vector<1x256xi1> to vector<1x256xi1>
    %112 = vector.broadcast %111 : vector<1x256xi1> to vector<8x256xi1>
    %113 = arith.select %112, %109, %110 : vector<8x256xi1>, vector<8x256xf32>
    %c64 = arith.constant 64 : index
    %c0_68 = arith.constant 0 : index
    %114 = vector.load %arg8[%c64, %c0_68] : memref<72x512xf32, #tpu.memory_space<vmem>>, vector<8x256xf32>
    tpu.vector_store %arg8[%c64, %c0_68], %113 {strides = array<i32>} : memref<72x512xf32, #tpu.memory_space<vmem>>, vector<8x256xf32>,
    %c0_69 = arith.constant 0 : index
    %c657 = arith.constant 657 : index
    %115 = vector.load %arg9[%c0_69, %c657] : memref<8x1024xf32, #tpu.memory_space<vmem>>, vector<8x256xf32>
    %cst_70 = arith.constant 0.000000e+00 : f32
    %116 = vector.broadcast %cst_70 : f32 to vector<8x256xf32>
    %117 = vector.shape_cast %20 : vector<1x256xi1> to vector<1x256xi1>
    %118 = vector.broadcast %117 : vector<1x256xi1> to vector<8x256xi1>
    %119 = arith.select %118, %115, %116 : vector<8x256xi1>, vector<8x256xf32>
    %c64_71 = arith.constant 64 : index
    %c256_72 = arith.constant 256 : index
    %120 = vector.load %arg8[%c64_71, %c256_72] : memref<72x512xf32, #tpu.memory_space<vmem>>, vector<8x256xf32>
    tpu.vector_store %arg8[%c64_71, %c256_72], %119 {strides = array<i32>} : memref<72x512xf32, #tpu.memory_space<vmem>>, vector<8x256xf32>,
    %c0_73 = arith.constant 0 : index
    %c0_74 = arith.constant 0 : index
    %121 = vector.load %arg2[%c0_73, %c0_74] : memref<8x72xbf16, #tpu.memory_space<vmem>>, vector<8x72xbf16>
    %c0_75 = arith.constant 0 : index
    %c0_76 = arith.constant 0 : index
    %122 = vector.load %arg8[%c0_75, %c0_76] : memref<72x512xf32, #tpu.memory_space<vmem>>, vector<72x512xf32>
    %123 = arith.truncf %122 : vector<72x512xf32> to vector<72x512xbf16>
    %cst_77 = arith.constant dense<0.000000e+00> : vector<8x512xf32>
    %124 = tpu.matmul %121, %123, %cst_77 {dimension_numbers = #tpu.dot_dimension_numbers<[1], [0], [0], [1], [0, 0, 1, 1], [], []>} : vector<8x72xbf16>, vector<72x512xbf16>, vector<8x512xf32> -> vector<8x512xf32>
    %c0_78 = arith.constant 0 : index
    %c0_79 = arith.constant 0 : index
    %125 = vector.load %arg3[%c0_78, %c0_79] : memref<8x1xf32, #tpu.memory_space<vmem>>, vector<8x1xf32>
    %126 = vector.broadcast %125 : vector<8x1xf32> to vector<8x512xf32>
    %127 = arith.addf %124, %126 : vector<8x512xf32>
    %cst_80 = arith.constant 0.00999999977 : f32
    %128 = vector.broadcast %cst_80 : f32 to vector<8x512xf32>
    %129 = arith.mulf %128, %127 : vector<8x512xf32>
    %130 = arith.maximumf %127, %129 : vector<8x512xf32>
    %131 = vector.extract_strided_slice %130 {offsets = [0, 0], sizes = [8, 256], strides = [1, 1]} : vector<8x512xf32> to vector<8x256xf32>
    %cst_81 = arith.constant 0.000000e+00 : f32
    %132 = vector.broadcast %cst_81 : f32 to vector<8x128xf32>
    %cst_82 = arith.constant 0.000000e+00 : f32
    %133 = vector.broadcast %cst_82 : f32 to vector<8x128xf32>
    %134 = tpu.concatenate %132, %131, %133 in 1 : vector<8x128xf32>, vector<8x256xf32>, vector<8x128xf32> -> vector<8x512xf32>
    %c0_83 = arith.constant 0 : index
    %c0_84 = arith.constant 0 : index
    %135 = vector.load %arg10[%c0_83, %c0_84] : memref<8x1024xf32, #tpu.memory_space<vmem>>, vector<8x512xf32>
    tpu.vector_store %arg10[%c0_83, %c0_84], %134 {strides = array<i32>} : memref<8x1024xf32, #tpu.memory_space<vmem>>, vector<8x512xf32>,
    %136 = vector.extract_strided_slice %130 {offsets = [0, 256], sizes = [8, 256], strides = [1, 1]} : vector<8x512xf32> to vector<8x256xf32>
    %cst_85 = arith.constant 0.000000e+00 : f32
    %137 = vector.broadcast %cst_85 : f32 to vector<8x128xf32>
    %cst_86 = arith.constant 0.000000e+00 : f32
    %138 = vector.broadcast %cst_86 : f32 to vector<8x128xf32>
    %139 = tpu.concatenate %137, %136, %138 in 1 : vector<8x128xf32>, vector<8x256xf32>, vector<8x128xf32> -> vector<8x512xf32>
    %c0_87 = arith.constant 0 : index
    %c512_88 = arith.constant 512 : index
    %140 = vector.load %arg10[%c0_87, %c512_88] : memref<8x1024xf32, #tpu.memory_space<vmem>>, vector<8x512xf32>
    tpu.vector_store %arg10[%c0_87, %c512_88], %139 {strides = array<i32>} : memref<8x1024xf32, #tpu.memory_space<vmem>>, vector<8x512xf32>,
    %c0_89 = arith.constant 0 : index
    %c111_90 = arith.constant 111 : index
    %141 = vector.load %arg10[%c0_89, %c111_90] : memref<8x1024xf32, #tpu.memory_space<vmem>>, vector<8x256xf32>
    %cst_91 = arith.constant 0.000000e+00 : f32
    %142 = vector.broadcast %cst_91 : f32 to vector<8x256xf32>
    %143 = vector.shape_cast %18 : vector<1x256xi1> to vector<1x256xi1>
    %144 = vector.broadcast %143 : vector<1x256xi1> to vector<8x256xi1>
    %145 = arith.select %144, %141, %142 : vector<8x256xi1>, vector<8x256xf32>
    %c0_92 = arith.constant 0 : index
    %c0_93 = arith.constant 0 : index
    %146 = vector.load %arg8[%c0_92, %c0_93] : memref<72x512xf32, #tpu.memory_space<vmem>>, vector<8x256xf32>
    tpu.vector_store %arg8[%c0_92, %c0_93], %145 {strides = array<i32>} : memref<72x512xf32, #tpu.memory_space<vmem>>, vector<8x256xf32>,
    %c0_94 = arith.constant 0 : index
    %c623_95 = arith.constant 623 : index
    %147 = vector.load %arg10[%c0_94, %c623_95] : memref<8x1024xf32, #tpu.memory_space<vmem>>, vector<8x256xf32>
    %cst_96 = arith.constant 0.000000e+00 : f32
    %148 = vector.broadcast %cst_96 : f32 to vector<8x256xf32>
    %149 = vector.shape_cast %18 : vector<1x256xi1> to vector<1x256xi1>
    %150 = vector.broadcast %149 : vector<1x256xi1> to vector<8x256xi1>
    %151 = arith.select %150, %147, %148 : vector<8x256xi1>, vector<8x256xf32>
    %c0_97 = arith.constant 0 : index
    %c256_98 = arith.constant 256 : index
    %152 = vector.load %arg8[%c0_97, %c256_98] : memref<72x512xf32, #tpu.memory_space<vmem>>, vector<8x256xf32>
    tpu.vector_store %arg8[%c0_97, %c256_98], %151 {strides = array<i32>} : memref<72x512xf32, #tpu.memory_space<vmem>>, vector<8x256xf32>,
    %c0_99 = arith.constant 0 : index
    %c112_100 = arith.constant 112 : index
    %153 = vector.load %arg10[%c0_99, %c112_100] : memref<8x1024xf32, #tpu.memory_space<vmem>>, vector<8x256xf32>
    %c8_101 = arith.constant 8 : index
    %c0_102 = arith.constant 0 : index
    %154 = vector.load %arg8[%c8_101, %c0_102] : memref<72x512xf32, #tpu.memory_space<vmem>>, vector<8x256xf32>
    tpu.vector_store %arg8[%c8_101, %c0_102], %153 {strides = array<i32>} : memref<72x512xf32, #tpu.memory_space<vmem>>, vector<8x256xf32>,
    %c0_103 = arith.constant 0 : index
    %c624_104 = arith.constant 624 : index
    %155 = vector.load %arg10[%c0_103, %c624_104] : memref<8x1024xf32, #tpu.memory_space<vmem>>, vector<8x256xf32>
    %c8_105 = arith.constant 8 : index
    %c256_106 = arith.constant 256 : index
    %156 = vector.load %arg8[%c8_105, %c256_106] : memref<72x512xf32, #tpu.memory_space<vmem>>, vector<8x256xf32>
    tpu.vector_store %arg8[%c8_105, %c256_106], %155 {strides = array<i32>} : memref<72x512xf32, #tpu.memory_space<vmem>>, vector<8x256xf32>,
    %c0_107 = arith.constant 0 : index
    %c113_108 = arith.constant 113 : index
    %157 = vector.load %arg10[%c0_107, %c113_108] : memref<8x1024xf32, #tpu.memory_space<vmem>>, vector<8x256xf32>
    %cst_109 = arith.constant 0.000000e+00 : f32
    %158 = vector.broadcast %cst_109 : f32 to vector<8x256xf32>
    %159 = vector.shape_cast %20 : vector<1x256xi1> to vector<1x256xi1>
    %160 = vector.broadcast %159 : vector<1x256xi1> to vector<8x256xi1>
    %161 = arith.select %160, %157, %158 : vector<8x256xi1>, vector<8x256xf32>
    %c16_110 = arith.constant 16 : index
    %c0_111 = arith.constant 0 : index
    %162 = vector.load %arg8[%c16_110, %c0_111] : memref<72x512xf32, #tpu.memory_space<vmem>>, vector<8x256xf32>
    tpu.vector_store %arg8[%c16_110, %c0_111], %161 {strides = array<i32>} : memref<72x512xf32, #tpu.memory_space<vmem>>, vector<8x256xf32>,
    %c0_112 = arith.constant 0 : index
    %c625_113 = arith.constant 625 : index
    %163 = vector.load %arg10[%c0_112, %c625_113] : memref<8x1024xf32, #tpu.memory_space<vmem>>, vector<8x256xf32>
    %cst_114 = arith.constant 0.000000e+00 : f32
    %164 = vector.broadcast %cst_114 : f32 to vector<8x256xf32>
    %165 = vector.shape_cast %20 : vector<1x256xi1> to vector<1x256xi1>
    %166 = vector.broadcast %165 : vector<1x256xi1> to vector<8x256xi1>
    %167 = arith.select %166, %163, %164 : vector<8x256xi1>, vector<8x256xf32>
    %c16_115 = arith.constant 16 : index
    %c256_116 = arith.constant 256 : index
    %168 = vector.load %arg8[%c16_115, %c256_116] : memref<72x512xf32, #tpu.memory_space<vmem>>, vector<8x256xf32>
    tpu.vector_store %arg8[%c16_115, %c256_116], %167 {strides = array<i32>} : memref<72x512xf32, #tpu.memory_space<vmem>>, vector<8x256xf32>,
    %c0_117 = arith.constant 0 : index
    %c127_118 = arith.constant 127 : index
    %169 = vector.load %arg10[%c0_117, %c127_118] : memref<8x1024xf32, #tpu.memory_space<vmem>>, vector<8x256xf32>
    %cst_119 = arith.constant 0.000000e+00 : f32
    %170 = vector.broadcast %cst_119 : f32 to vector<8x256xf32>
    %171 = vector.shape_cast %18 : vector<1x256xi1> to vector<1x256xi1>
    %172 = vector.broadcast %171 : vector<1x256xi1> to vector<8x256xi1>
    %173 = arith.select %172, %169, %170 : vector<8x256xi1>, vector<8x256xf32>
    %c24_120 = arith.constant 24 : index
    %c0_121 = arith.constant 0 : index
    %174 = vector.load %arg8[%c24_120, %c0_121] : memref<72x512xf32, #tpu.memory_space<vmem>>, vector<8x256xf32>
    tpu.vector_store %arg8[%c24_120, %c0_121], %173 {strides = array<i32>} : memref<72x512xf32, #tpu.memory_space<vmem>>, vector<8x256xf32>,
    %c0_122 = arith.constant 0 : index
    %c639_123 = arith.constant 639 : index
    %175 = vector.load %arg10[%c0_122, %c639_123] : memref<8x1024xf32, #tpu.memory_space<vmem>>, vector<8x256xf32>
    %cst_124 = arith.constant 0.000000e+00 : f32
    %176 = vector.broadcast %cst_124 : f32 to vector<8x256xf32>
    %177 = vector.shape_cast %18 : vector<1x256xi1> to vector<1x256xi1>
    %178 = vector.broadcast %177 : vector<1x256xi1> to vector<8x256xi1>
    %179 = arith.select %178, %175, %176 : vector<8x256xi1>, vector<8x256xf32>
    %c24_125 = arith.constant 24 : index
    %c256_126 = arith.constant 256 : index
    %180 = vector.load %arg8[%c24_125, %c256_126] : memref<72x512xf32, #tpu.memory_space<vmem>>, vector<8x256xf32>
    tpu.vector_store %arg8[%c24_125, %c256_126], %179 {strides = array<i32>} : memref<72x512xf32, #tpu.memory_space<vmem>>, vector<8x256xf32>,
    %c0_127 = arith.constant 0 : index
    %c128_128 = arith.constant 128 : index
    %181 = vector.load %arg10[%c0_127, %c128_128] : memref<8x1024xf32, #tpu.memory_space<vmem>>, vector<8x256xf32>
    %c32_129 = arith.constant 32 : index
    %c0_130 = arith.constant 0 : index
    %182 = vector.load %arg8[%c32_129, %c0_130] : memref<72x512xf32, #tpu.memory_space<vmem>>, vector<8x256xf32>
    tpu.vector_store %arg8[%c32_129, %c0_130], %181 {strides = array<i32>} : memref<72x512xf32, #tpu.memory_space<vmem>>, vector<8x256xf32>,
    %c0_131 = arith.constant 0 : index
    %c640_132 = arith.constant 640 : index
    %183 = vector.load %arg10[%c0_131, %c640_132] : memref<8x1024xf32, #tpu.memory_space<vmem>>, vector<8x256xf32>
    %c32_133 = arith.constant 32 : index
    %c256_134 = arith.constant 256 : index
    %184 = vector.load %arg8[%c32_133, %c256_134] : memref<72x512xf32, #tpu.memory_space<vmem>>, vector<8x256xf32>
    tpu.vector_store %arg8[%c32_133, %c256_134], %183 {strides = array<i32>} : memref<72x512xf32, #tpu.memory_space<vmem>>, vector<8x256xf32>,
    %c0_135 = arith.constant 0 : index
    %c129_136 = arith.constant 129 : index
    %185 = vector.load %arg10[%c0_135, %c129_136] : memref<8x1024xf32, #tpu.memory_space<vmem>>, vector<8x256xf32>
    %cst_137 = arith.constant 0.000000e+00 : f32
    %186 = vector.broadcast %cst_137 : f32 to vector<8x256xf32>
    %187 = vector.shape_cast %20 : vector<1x256xi1> to vector<1x256xi1>
    %188 = vector.broadcast %187 : vector<1x256xi1> to vector<8x256xi1>
    %189 = arith.select %188, %185, %186 : vector<8x256xi1>, vector<8x256xf32>
    %c40_138 = arith.constant 40 : index
    %c0_139 = arith.constant 0 : index
    %190 = vector.load %arg8[%c40_138, %c0_139] : memref<72x512xf32, #tpu.memory_space<vmem>>, vector<8x256xf32>
    tpu.vector_store %arg8[%c40_138, %c0_139], %189 {strides = array<i32>} : memref<72x512xf32, #tpu.memory_space<vmem>>, vector<8x256xf32>,
    %c0_140 = arith.constant 0 : index
    %c641_141 = arith.constant 641 : index
    %191 = vector.load %arg10[%c0_140, %c641_141] : memref<8x1024xf32, #tpu.memory_space<vmem>>, vector<8x256xf32>
    %cst_142 = arith.constant 0.000000e+00 : f32
    %192 = vector.broadcast %cst_142 : f32 to vector<8x256xf32>
    %193 = vector.shape_cast %20 : vector<1x256xi1> to vector<1x256xi1>
    %194 = vector.broadcast %193 : vector<1x256xi1> to vector<8x256xi1>
    %195 = arith.select %194, %191, %192 : vector<8x256xi1>, vector<8x256xf32>
    %c40_143 = arith.constant 40 : index
    %c256_144 = arith.constant 256 : index
    %196 = vector.load %arg8[%c40_143, %c256_144] : memref<72x512xf32, #tpu.memory_space<vmem>>, vector<8x256xf32>
    tpu.vector_store %arg8[%c40_143, %c256_144], %195 {strides = array<i32>} : memref<72x512xf32, #tpu.memory_space<vmem>>, vector<8x256xf32>,
    %c0_145 = arith.constant 0 : index
    %c143_146 = arith.constant 143 : index
    %197 = vector.load %arg10[%c0_145, %c143_146] : memref<8x1024xf32, #tpu.memory_space<vmem>>, vector<8x256xf32>
    %cst_147 = arith.constant 0.000000e+00 : f32
    %198 = vector.broadcast %cst_147 : f32 to vector<8x256xf32>
    %199 = vector.shape_cast %18 : vector<1x256xi1> to vector<1x256xi1>
    %200 = vector.broadcast %199 : vector<1x256xi1> to vector<8x256xi1>
    %201 = arith.select %200, %197, %198 : vector<8x256xi1>, vector<8x256xf32>
    %c48_148 = arith.constant 48 : index
    %c0_149 = arith.constant 0 : index
    %202 = vector.load %arg8[%c48_148, %c0_149] : memref<72x512xf32, #tpu.memory_space<vmem>>, vector<8x256xf32>
    tpu.vector_store %arg8[%c48_148, %c0_149], %201 {strides = array<i32>} : memref<72x512xf32, #tpu.memory_space<vmem>>, vector<8x256xf32>,
    %c0_150 = arith.constant 0 : index
    %c655_151 = arith.constant 655 : index
    %203 = vector.load %arg10[%c0_150, %c655_151] : memref<8x1024xf32, #tpu.memory_space<vmem>>, vector<8x256xf32>
    %cst_152 = arith.constant 0.000000e+00 : f32
    %204 = vector.broadcast %cst_152 : f32 to vector<8x256xf32>
    %205 = vector.shape_cast %18 : vector<1x256xi1> to vector<1x256xi1>
    %206 = vector.broadcast %205 : vector<1x256xi1> to vector<8x256xi1>
    %207 = arith.select %206, %203, %204 : vector<8x256xi1>, vector<8x256xf32>
    %c48_153 = arith.constant 48 : index
    %c256_154 = arith.constant 256 : index
    %208 = vector.load %arg8[%c48_153, %c256_154] : memref<72x512xf32, #tpu.memory_space<vmem>>, vector<8x256xf32>
    tpu.vector_store %arg8[%c48_153, %c256_154], %207 {strides = array<i32>} : memref<72x512xf32, #tpu.memory_space<vmem>>, vector<8x256xf32>,
    %c0_155 = arith.constant 0 : index
    %c144_156 = arith.constant 144 : index
    %209 = vector.load %arg10[%c0_155, %c144_156] : memref<8x1024xf32, #tpu.memory_space<vmem>>, vector<8x256xf32>
    %c56_157 = arith.constant 56 : index
    %c0_158 = arith.constant 0 : index
    %210 = vector.load %arg8[%c56_157, %c0_158] : memref<72x512xf32, #tpu.memory_space<vmem>>, vector<8x256xf32>
    tpu.vector_store %arg8[%c56_157, %c0_158], %209 {strides = array<i32>} : memref<72x512xf32, #tpu.memory_space<vmem>>, vector<8x256xf32>,
    %c0_159 = arith.constant 0 : index
    %c656_160 = arith.constant 656 : index
    %211 = vector.load %arg10[%c0_159, %c656_160] : memref<8x1024xf32, #tpu.memory_space<vmem>>, vector<8x256xf32>
    %c56_161 = arith.constant 56 : index
    %c256_162 = arith.constant 256 : index
    %212 = vector.load %arg8[%c56_161, %c256_162] : memref<72x512xf32, #tpu.memory_space<vmem>>, vector<8x256xf32>
    tpu.vector_store %arg8[%c56_161, %c256_162], %211 {strides = array<i32>} : memref<72x512xf32, #tpu.memory_space<vmem>>, vector<8x256xf32>,
    %c0_163 = arith.constant 0 : index
    %c145_164 = arith.constant 145 : index
    %213 = vector.load %arg10[%c0_163, %c145_164] : memref<8x1024xf32, #tpu.memory_space<vmem>>, vector<8x256xf32>
    %cst_165 = arith.constant 0.000000e+00 : f32
    %214 = vector.broadcast %cst_165 : f32 to vector<8x256xf32>
    %215 = vector.shape_cast %20 : vector<1x256xi1> to vector<1x256xi1>
    %216 = vector.broadcast %215 : vector<1x256xi1> to vector<8x256xi1>
    %217 = arith.select %216, %213, %214 : vector<8x256xi1>, vector<8x256xf32>
    %c64_166 = arith.constant 64 : index
    %c0_167 = arith.constant 0 : index
    %218 = vector.load %arg8[%c64_166, %c0_167] : memref<72x512xf32, #tpu.memory_space<vmem>>, vector<8x256xf32>
    tpu.vector_store %arg8[%c64_166, %c0_167], %217 {strides = array<i32>} : memref<72x512xf32, #tpu.memory_space<vmem>>, vector<8x256xf32>,
    %c0_168 = arith.constant 0 : index
    %c657_169 = arith.constant 657 : index
    %219 = vector.load %arg10[%c0_168, %c657_169] : memref<8x1024xf32, #tpu.memory_space<vmem>>, vector<8x256xf32>
    %cst_170 = arith.constant 0.000000e+00 : f32
    %220 = vector.broadcast %cst_170 : f32 to vector<8x256xf32>
    %221 = vector.shape_cast %20 : vector<1x256xi1> to vector<1x256xi1>
    %222 = vector.broadcast %221 : vector<1x256xi1> to vector<8x256xi1>
    %223 = arith.select %222, %219, %220 : vector<8x256xi1>, vector<8x256xf32>
    %c64_171 = arith.constant 64 : index
    %c256_172 = arith.constant 256 : index
    %224 = vector.load %arg8[%c64_171, %c256_172] : memref<72x512xf32, #tpu.memory_space<vmem>>, vector<8x256xf32>
    tpu.vector_store %arg8[%c64_171, %c256_172], %223 {strides = array<i32>} : memref<72x512xf32, #tpu.memory_space<vmem>>, vector<8x256xf32>,
    %c0_173 = arith.constant 0 : index
    %c0_174 = arith.constant 0 : index
    %225 = vector.load %arg4[%c0_173, %c0_174] : memref<8x72xbf16, #tpu.memory_space<vmem>>, vector<8x72xbf16>
    %c0_175 = arith.constant 0 : index
    %c0_176 = arith.constant 0 : index
    %226 = vector.load %arg8[%c0_175, %c0_176] : memref<72x512xf32, #tpu.memory_space<vmem>>, vector<72x512xf32>
    %227 = arith.truncf %226 : vector<72x512xf32> to vector<72x512xbf16>
    %cst_177 = arith.constant dense<0.000000e+00> : vector<8x512xf32>
    %228 = tpu.matmul %225, %227, %cst_177 {dimension_numbers = #tpu.dot_dimension_numbers<[1], [0], [0], [1], [0, 0, 1, 1], [], []>} : vector<8x72xbf16>, vector<72x512xbf16>, vector<8x512xf32> -> vector<8x512xf32>
    %c0_178 = arith.constant 0 : index
    %c0_179 = arith.constant 0 : index
    %229 = vector.load %arg5[%c0_178, %c0_179] : memref<8x1xf32, #tpu.memory_space<vmem>>, vector<8x1xf32>
    %230 = vector.broadcast %229 : vector<8x1xf32> to vector<8x512xf32>
    %231 = arith.addf %228, %230 : vector<8x512xf32>
    %cst_180 = arith.constant 0.00999999977 : f32
    %232 = vector.broadcast %cst_180 : f32 to vector<8x512xf32>
    %233 = arith.mulf %232, %231 : vector<8x512xf32>
    %234 = arith.maximumf %231, %233 : vector<8x512xf32>
    %cst_181 = arith.constant 0.000000e+00 : f32
    %235 = vector.broadcast %cst_181 : f32 to vector<8x128xf32>
    %236 = tpu.concatenate %234, %235 in 1 : vector<8x512xf32>, vector<8x128xf32> -> vector<8x640xf32>
    %c0_182 = arith.constant 0 : index
    %c0_183 = arith.constant 0 : index
    %237 = vector.load %arg11[%c0_182, %c0_183] : memref<8x640xf32, #tpu.memory_space<vmem>>, vector<8x640xf32>
    tpu.vector_store %arg11[%c0_182, %c0_183], %236 {strides = array<i32>} : memref<8x640xf32, #tpu.memory_space<vmem>>, vector<8x640xf32>,
    %c0_184 = arith.constant 0 : index
    %c1_185 = arith.constant 1 : index
    %238 = vector.load %arg11[%c0_184, %c1_185] : memref<8x640xf32, #tpu.memory_space<vmem>>, vector<8x512xf32>
    %239 = arith.maximumf %234, %238 : vector<8x512xf32>
    %c0_186 = arith.constant 0 : index
    %c16_187 = arith.constant 16 : index
    %240 = vector.load %arg11[%c0_186, %c16_187] : memref<8x640xf32, #tpu.memory_space<vmem>>, vector<8x512xf32>
    %241 = arith.maximumf %239, %240 : vector<8x512xf32>
    %c0_188 = arith.constant 0 : index
    %c17 = arith.constant 17 : index
    %242 = vector.load %arg11[%c0_188, %c17] : memref<8x640xf32, #tpu.memory_space<vmem>>, vector<8x512xf32>
    %243 = arith.maximumf %241, %242 : vector<8x512xf32>
    %244 = arith.truncf %243 : vector<8x512xf32> to vector<8x512xbf16>
    %c0_189 = arith.constant 0 : index
    %c0_190 = arith.constant 0 : index
    %245 = vector.load %arg6[%c0_189, %c0_190] : memref<512x128xbf16, #tpu.memory_space<vmem>>, vector<512x128xbf16>
    %cst_191 = arith.constant dense<0.000000e+00> : vector<8x128xf32>
    %246 = tpu.matmul %244, %245, %cst_191 {dimension_numbers = #tpu.dot_dimension_numbers<[1], [0], [0], [1], [0, 0, 1, 1], [], []>} : vector<8x512xbf16>, vector<512x128xbf16>, vector<8x128xf32> -> vector<8x128xf32>
    %c0_192 = arith.constant 0 : index
    %c0_193 = arith.constant 0 : index
    %c0_194 = arith.constant 0 : index
    %247 = vector.load %arg7[%c0_192, %c0_193, %c0_194] : memref<1x8x128xf32, #tpu.memory_space<vmem>>, vector<1x8x128xf32>
    %248 = vector.shape_cast %247 : vector<1x8x128xf32> to vector<8x128xf32>
    %249 = vector.shape_cast %246 : vector<8x128xf32> to vector<1x8x128xf32>
    tpu.vector_store %arg7[%c0_192, %c0_193, %c0_194], %249 {strides = array<i32>} : memref<1x8x128xf32, #tpu.memory_space<vmem>>, vector<1x8x128xf32>,
    return
  }
  func.func @transform_0(%arg0: i32) -> (i32, i32, i32) {
    %c0_i32 = arith.constant 0 : i32
    %c0_i32_0 = arith.constant 0 : i32
    %c0_i32_1 = arith.constant 0 : i32
    return %arg0, %c0_i32, %c0_i32_0 : i32, i32, i32
  }
  func.func @transform_1(%arg0: i32) -> (i32, i32) {
    %c0_i32 = arith.constant 0 : i32
    %c0_i32_0 = arith.constant 0 : i32
    %c0_i32_1 = arith.constant 0 : i32
    return %c0_i32, %c0_i32_0 : i32, i32
  }
  func.func @transform_2(%arg0: i32) -> (i32, i32) {
    %c0_i32 = arith.constant 0 : i32
    %c0_i32_0 = arith.constant 0 : i32
    %c0_i32_1 = arith.constant 0 : i32
    return %c0_i32, %c0_i32_0 : i32, i32
  }
  func.func @transform_3(%arg0: i32) -> (i32, i32) {
    %c0_i32 = arith.constant 0 : i32
    %c0_i32_0 = arith.constant 0 : i32
    %c0_i32_1 = arith.constant 0 : i32
    return %c0_i32, %c0_i32_0 : i32, i32
  }
  func.func @transform_4(%arg0: i32) -> (i32, i32) {
    %c0_i32 = arith.constant 0 : i32
    %c0_i32_0 = arith.constant 0 : i32
    %c0_i32_1 = arith.constant 0 : i32
    return %c0_i32, %c0_i32_0 : i32, i32
  }
  func.func @transform_5(%arg0: i32) -> (i32, i32) {
    %c0_i32 = arith.constant 0 : i32
    %c0_i32_0 = arith.constant 0 : i32
    %c0_i32_1 = arith.constant 0 : i32
    return %c0_i32, %c0_i32_0 : i32, i32
  }
  func.func @transform_6(%arg0: i32) -> (i32, i32, i32) {
    %c0_i32 = arith.constant 0 : i32
    %c0_i32_0 = arith.constant 0 : i32
    %c0_i32_1 = arith.constant 0 : i32
    return %arg0, %c0_i32, %c0_i32_0 : i32, i32, i32
  }
}

</mosaic_0001>

<bundles_post_ra>
// kernel: conv_block_pallas.1
= control target key start
LH: loop header
LB: loop body
LE: loop exit
PB: predicated region body
PF: predicated region fallthrough
CT: control target
= control target key end

     0   :  { %vm2549_vm0 = vcmask 1043456   ;;  %v1956_v5 = vmov 0.0   ;;  %s1957_s25 = smov 112   ;;  %s1958_s26 = smov 113   ;;  %v24_v18 = vlaneseq  ;;  %vm2550_vm2 = vcmask 908288   ;;  %s2538_s0 = inlined_call_operand.vmem [shape: f32[2,4,256], index: 0, kind: input, shape index: {}]   ;;  %s2539_s1 = inlined_call_operand.vmem [shape: bf16[8,72], index: 1, kind: input, shape index: {}]   ;;  %s2540_s2 = inlined_call_operand.vmem [shape: f32[8,1], index: 2, kind: input, shape index: {}]   ;;  %s2541_s4 = inlined_call_operand.vmem [shape: f32[8,1], index: 4, kind: input, shape index: {}]   ;;  %s2542_s3 = inlined_call_operand.vmem [shape: bf16[8,72], index: 3, kind: input, shape index: {}]   ;;  %s2543_s5 = inlined_call_operand.vmem [shape: bf16[512,128], index: 5, kind: input, shape index: {}]   ;;  %s2544_s6 = inlined_call_operand.vmem [shape: f32[1,8,128], index: 6, kind: output, shape index: {}]  }
   0x1   :  { %v55_v0 = vld [vmem:[%s2538_s0] sm:$0xff]  ;;  %v1422_v1 = vld [vmem:[%s2538_s0 + $0x8] sm:$0xff]  ;;  %s1959_s27 = smov 111   ;;  %s1960_s0 = smov 127   ;;  %vm353_vm5 = vcmask 916480   ;;  %vm312_vm6 = vcmask 924672  }
   0x2   :  { %57 = vst [vmem:[#allocation1] ss:$2 sm:$0xff] %v55_v0  ;;  %s1961_s28 = smov 15   ;;  %s1962_s29 = smov 1   ;;  %v25_v19 = vand.u32 127, %v24_v18  ;;  %vm2545_vm8 = vmmov 1  }
   0x3   :  { %s1963_s30 = smov 16   ;;  %s1964_s7 = smov 17   ;;  %vm2547_vm10 = vcmask 1039360   ;;  %vm181_vm14 = vcmask 121856   ;;  %vm2548_vm15 = vcmask 7168  }
   0x4   :  { %v26_v23 = vadd.s32 128, %v25_v19  ;;  %v31_v24 = vand.u32 15, %v25_v19 }
   0x6   :  { %v38_v25 = vand.u32 15, %v26_v23  ;;  %vm2062_vm1 = vcmp.le.s32.totalorder %v31_v24, 14  ;;  %vm2078_vm4 = vcmp.ge.s32.totalorder %v31_v24, 1 }
   0x7   :  { %vm2093_vm9 = vmpackc.low %vm2545_vm8, %vm2078_vm4 }
   0x8   :  { %vm2067_vm3 = vcmp.le.s32.totalorder %v38_v25, 14  ;;  %vm2084_vm7 = vcmp.ge.s32.totalorder %v38_v25, 1  ;;  %vm2120_vm12 = vmpackc.low %vm2062_vm1, %vm2549_vm0 }
   0x9   :  { %v2008_v2 = vld.sshfl [vmem:[#allocation1] sm:$0xff pattern:$0x75316420]  ;;  %v2010_v3 = vld.sshfl [vmem:[#allocation1 + $0x8] sm:$0xff pattern:$0x75316420]  ;;  %vm2106_vm11 = vmpackc.low %vm2545_vm8, %vm2084_vm7 }
   0xa   :  { %v63_v4 = vsel %vm2549_vm0, %v2008_v2, 0.0  ;;  %72 = vst [vmem:[#allocation1] ss:$2 sm:$0xff] %v1422_v1  ;;  %v64_v14 = vsel %vm2549_vm0, %v2010_v3, 0.0  ;;  %vm2129_vm13 = vmpackc.low %vm2067_vm3, %vm2549_vm0 }
   0xb   :  { %v1708_v6 = vpack.i.bf16 %v63_v4, %v1956_v5  ;;  %v1773_v15 = vpack.i.bf16 0.0, %v64_v14  ;;  %v1788_v16 = vpack.i.bf16 %v64_v14, %v63_v4  ;;  %vm2149_vm8 = vmpackc.low %vm2078_vm4, %vm2062_vm1  ;;  %vm140_vm4 = vcmask 130048  }
   0xd   :  { %1709 = vrot.lane.b32.xlu2 %v1708_v6, %s1957_s25  ;;  %1704 = vrot.lane.b32.xlu1 %v1708_v6, %s1958_s26 }
   0xe   :  { %1699 = vrot.lane.b32.xlu0 %v1708_v6, %s1959_s27 }
  0x11   :  { %v2018_v7 = vld.sshfl [vmem:[#allocation1] sm:$0xff pattern:$0x75316420]  ;;  %v2020_v8 = vld.sshfl [vmem:[#allocation1 + $0x8] sm:$0xff pattern:$0x75316420] }
  0x12   :  { %v77_v9 = vsel %vm2549_vm0, %v2018_v7, 0.0  ;;  %v78_v10 = vsel %vm2549_vm0, %v2020_v8, 0.0 }
  0x13   :  { %v1728_v11 = vpack.i.bf16 %v78_v10, %v77_v9  ;;  %v1738_v12 = vpack.i.bf16 %v77_v9, %v1956_v5  ;;  %v1753_v13 = vpack.i.bf16 0.0, %v78_v10 }
  0x15   :  { %1729 = vrot.lane.b32.xlu2 %v1728_v11, %s1957_s25  ;;  %1714 = vrot.lane.b32.xlu1 %v1708_v6, %s1960_s0 }
  0x16   :  { %1719 = vrot.lane.b32.xlu0 %v1728_v11, %s1959_s27 }
  0x1d   :  { %1739 = vrot.lane.b32.xlu2 %v1738_v12, %s1961_s28  ;;  %1724 = vrot.lane.b32.xlu1 %v1728_v11, %s1958_s26 }
  0x1e   :  { %1734 = vrot.lane.b32.xlu0 %v1728_v11, %s1960_s0 }
  0x25   :  { %1754 = vrot.lane.b32.xlu2 %v1753_v13, %s1962_s29  ;;  %1749 = vrot.lane.b32.xlu1 %v1738_v12, %s1962_s29 }
  0x26   :  { %1744 = vrot.lane.b32.xlu0 %v1753_v13, %s1961_s28 }
  0x2d   :  { %1764 = vrot.lane.b32.xlu2 %v1738_v12, %s1963_s30  ;;  %118 = vrot.lane.b32.xlu1 %v78_v10, %s1964_s7 }
  0x2e   :  { %1759 = vrot.lane.b32.xlu0 %v1738_v12, %s1964_s7 }
  0x35   :  { %1774 = vrot.lane.b32.xlu2 %v1773_v15, %s1958_s26  ;;  %1769 = vrot.lane.b32.xlu1 %v1773_v15, %s1959_s27 }
  0x36   :  { %157 = vrot.lane.b32.xlu0 %v78_v10, %s1963_s30 }
  0x3d   :  { %1789 = vrot.lane.b32.xlu2 %v1788_v16, %s1961_s28  ;;  %1784 = vrot.lane.b32.xlu1 %v1773_v15, %s1960_s0 }
  0x3e   :  { %1779 = vrot.lane.b32.xlu0 %v1773_v15, %s1957_s25 }
  0x45   :  { %1799 = vrot.lane.b32.xlu1 %v1708_v6, %s1964_s7  ;;  %97 = vrot.lane.b32.xlu2 %v64_v14, %s1964_s7 }
  0x46   :  { %1794 = vrot.lane.b32.xlu0 %v1788_v16, %s1962_s29 }
  0x4d   :  { %138 = vrot.lane.b32.xlu1 %v64_v14, %s1963_s30 }
  0x4e   :  { %1804 = vrot.lane.b32.xlu0 %v1708_v6, %s1963_s30 }
  0x67   :  { %v2052_v17 = vpop.permute.xlu2 %1709 }
  0x68   :  { %v1711_v39 = vunpack.i.l.bf16 %v2052_v17 }
  0x6f   :  { %v1730_v20 = vpop.permute.xlu2 %1729 }
  0x70   :  { %v1731_v36 = vunpack.i.l.bf16 %v1730_v20  ;;  %v1732_v42 = vunpack.i.h.bf16 %v1730_v20 }
  0x72   :  { %v372_v52 = vsel %vm353_vm5, %v1731_v36, %v1732_v42  ;;  %v373_v60 = vsel %vm353_vm5, %v1732_v42, %v1711_v39 }
  0x77   :  { %v2060_v27 = vpop.permute.xlu2 %1739 }
  0x78   :  { %v1741_v0 = vunpack.i.l.bf16 %v2060_v27  ;;  %v1742_v9 = vunpack.i.h.bf16 %v2060_v27 }
  0x7a   :  { %v202_v19 = vsel %vm181_vm14, %v1741_v0, %v1742_v9 }
  0x7f   :  { %v2054_v21 = vpop.permute.xlu1 %1704  ;;  %v2097_v56 = vpop.permute.xlu2 %1754 }
  0x80   :  { %v2056_v22 = vpop.permute.xlu0 %1699  ;;  %v1706_v48 = vunpack.i.l.bf16 %v2054_v21  ;;  %v1756_v10 = vunpack.i.l.bf16 %v2097_v56 }
  0x81   :  { %v1701_v30 = vunpack.i.l.bf16 %v2056_v22  ;;  %v1702_v43 = vunpack.i.h.bf16 %v2056_v22 }
  0x87   :  { %v2058_v26 = vpop.permute.xlu1 %1714 }
  0x88   :  { %v1720_v28 = vpop.permute.xlu0 %1719  ;;  %v1716_v57 = vunpack.i.l.bf16 %v2058_v26 }
  0x89   :  { %v1722_v31 = vunpack.i.h.bf16 %v1720_v28  ;;  %v1721_v32 = vunpack.i.l.bf16 %v1720_v28  ;;  %v1765_v28 = vpop.permute.xlu2 %1764 }
  0x8b   :  { %v411_v34 = vsel %vm2550_vm2, %v1721_v32, %v1722_v31  ;;  %v412_v35 = vsel %vm2550_vm2, %v1722_v31, %v1701_v30  ;;  %v1767_v31 = vunpack.i.h.bf16 %v1765_v28  ;;  %v1766_v32 = vunpack.i.l.bf16 %v1765_v28 }
  0x8c   :  { %v415_v37 = vsel %vm2062_vm1, %v411_v34, 0.0  ;;  %v416_v38 = vsel %vm2067_vm3, %v412_v35, 0.0 }
  0x8d   :  { %v474_v40 = vpack.c.bf16 %v415_v37, %v415_v37  ;;  %v475_v41 = vpack.c.bf16 %v416_v38, %v416_v38  ;;  %v159_v38 = vsel %vm140_vm4, %v1766_v32, %v1767_v31 }
  0x8f   :  { %v1725_v44 = vpop.permute.xlu1 %1724  ;;  %v493_v45 = vsel %vm2549_vm0, %v474_v40, 0  ;;  %v496_v46 = vsel %vm2549_vm0, %v475_v41, 0  ;;  %v2173_v41 = vld [vmem:[%s2539_s1] sm:$0xf] }
  0x90   :  { %v1727_v49 = vunpack.i.h.bf16 %v1725_v44  ;;  %v1726_v50 = vunpack.i.l.bf16 %v1725_v44  ;;  %v1735_v51 = vpop.permute.xlu0 %1734  ;;  %527 = vmatpush.bf16.msra.mxu2 %v493_v45  ;;  %540 = vmatpush.bf16.msra.mxu3 %v496_v46 }
  0x91   :  { %v1737_v53 = vunpack.i.h.bf16 %v1735_v51  ;;  %v1736_v54 = vunpack.i.l.bf16 %v1735_v51 }
  0x92   :  { %v333_v58 = vsel %vm312_vm6, %v1726_v50, %v1727_v49  ;;  %v334_v59 = vsel %vm312_vm6, %v1727_v49, %v1706_v48  ;;  %v476_v49 = vld [vmem:[%s2540_s2] sm:$0xff]  ;;  %v1775_v50 = vpop.permute.xlu2 %1774 }
  0x93   :  { %v1616_v62 = vpack.c.bf16 %v372_v52, %v333_v58  ;;  %v1628_v63 = vpack.c.bf16 %v373_v60, %v334_v59  ;;  %v292_v1 = vsel %vm2547_vm10, %v1736_v54, %v1737_v53  ;;  %v293_v4 = vsel %vm2547_vm10, %v1737_v53, %v1716_v57  ;;  %vm2158_vm10 = vmpackc.low %vm2084_vm7, %vm2067_vm3 }
  0x94   :  { %v1619_v13 = vpack.c.bf16 %v292_v1, %v2018_v7  ;;  %v1631_v14 = vpack.c.bf16 %v293_v4, %v2020_v8  ;;  %vm482_vm7 = vcmask 588800   ;;  %v1966_v53 = vmov 0  }
  0x95   :  { %1617 = vmatpush.bf16.msk.msra.mxu2 %vm2093_vm9, %v1616_v62  ;;  %1629 = vmatpush.bf16.msk.msra.mxu3 %vm2106_vm11, %v1628_v63  ;;  %v1777_v60 = vunpack.i.h.bf16 %v1775_v50  ;;  %v1776_v0 = vunpack.i.l.bf16 %v1775_v50  ;;  %v1712_v4 = vunpack.i.h.bf16 %v2052_v17 }
  0x96   :  { %1808 = vset.pattern.permute.xlu2 %v1966_v53  ;;  %1924 = vset.pattern.permute.xlu1 %v1966_v53 }
  0x97   :  { %v1750_v12 = vpop.permute.xlu1 %1749  ;;  %479 = vperm.xlu2 %1808, %v476_v49   ;;  %1955 = vset.pattern.permute.xlu0 %v1966_v53 }
  0x98   :  { %v1752_v15 = vunpack.i.h.bf16 %v1750_v12  ;;  %v1751_v16 = vunpack.i.l.bf16 %v1750_v12  ;;  %v2135_v18 = vpop.permute.xlu0 %1744 }
  0x99   :  { %v1746_v20 = vunpack.i.l.bf16 %v2135_v18  ;;  %1620 = vmatpush.bf16.msk.msra.mxu2 %vm2120_vm12, %v1619_v13  ;;  %1632 = vmatpush.bf16.msk.msra.mxu3 %vm2129_vm13, %v1631_v14  ;;  %v1747_v32 = vunpack.i.h.bf16 %v2135_v18 }
  0x9a   :  { %v244_v7 = vsel %vm2548_vm15, %v1752_v15, %v1756_v10  ;;  %v243_v8 = vsel %vm2548_vm15, %v1751_v16, %v1752_v15  ;;  %vm99_vm15 = vcmask 138240   ;;  %v314_v16 = vsel %vm312_vm6, %v1776_v0, %v1777_v60 }
  0x9b   :  { %v203_v24 = vsel %vm181_vm14, %v1742_v9, %v1746_v20  ;;  %v1622_v27 = vpack.c.bf16 %v243_v8, %v202_v19  ;;  %v1707_v9 = vunpack.i.h.bf16 %v2054_v21  ;;  %v1717_v19 = vunpack.i.h.bf16 %v2058_v26  ;;  %v1790_v8 = vpop.permute.xlu2 %1789 }
  0x9c   :  { %v1634_v30 = vpack.c.bf16 %v244_v7, %v203_v24  ;;  %v1792_v28 = vunpack.i.h.bf16 %v1790_v8 }
  0x9d   :  { %1623 = vmatpush.bf16.msk.msra.mxu2 %vm2149_vm8, %v1622_v27  ;;  %v313_v20 = vsel %vm312_vm6, %v1707_v9, %v1776_v0 }
  0x9e   :  { %1635 = vmatpush.bf16.msk.msra.mxu3 %vm2158_vm10, %v1634_v30 }
  0x9f   :  { %v119_v34 = vpop.permute.xlu1 %118 }
  0xa0   :  { %v1760_v35 = vpop.permute.xlu0 %1759 }
  0xa1   :  { %v1762_v36 = vunpack.i.h.bf16 %v1760_v35  ;;  %v1761_v37 = vunpack.i.l.bf16 %v1760_v35 }
  0xa3   :  { %v120_v39 = vsel %vm99_vm15, %v1761_v37, %v1762_v36  ;;  %v121_v47 = vsel %vm99_vm15, %v1762_v36, %v119_v34  ;;  %v1757_v37 = vunpack.i.h.bf16 %v2097_v56  ;;  %v98_v6 = vpop.permute.xlu2 %97 }
  0xa4   :  { %v1625_v40 = vpack.c.bf16 %v159_v38, %v120_v39 }
  0xa6   :  { %1626 = vmatpush.bf16.msk.msra.mxu2 %vm2093_vm9, %v1625_v40 }
  0xa7   :  { %v1770_v42 = vpop.permute.xlu1 %1769 }
  0xa8   :  { %v1772_v44 = vunpack.i.h.bf16 %v1770_v42  ;;  %v1771_v45 = vunpack.i.l.bf16 %v1770_v42  ;;  %v158_v46 = vpop.permute.xlu0 %157 }
  0xa9   :  { %v160_v48 = vsel %vm140_vm4, %v1767_v31, %v158_v46  ;;  %1425 = vmatmul.msk.bf16.vlgmr.msra.gmra.mxu2 %vm482_vm7, %v2173_v41  ;;  %v1791_v31 = vunpack.i.l.bf16 %v1790_v8 }
  0xaa   :  { %v1637_v51 = vpack.c.bf16 %v160_v48, %v121_v47  ;;  %v391_v52 = vsel %vm2550_vm2, %v1702_v43, %v1771_v45  ;;  %v392_v22 = vsel %vm2550_vm2, %v1771_v45, %v1772_v44 }
  0xab   :  { %v395_v54 = vsel %vm2062_vm1, %v391_v52, 0.0  ;;  %v396_v57 = vsel %vm2067_vm3, %v392_v22, 0.0  ;;  %v183_v40 = vsel %vm181_vm14, %v1791_v31, %v1792_v28 }
  0xac   :  { %1638 = vmatpush.bf16.msk.msra.mxu3 %vm2106_vm11, %v1637_v51  ;;  %v472_v58 = vpack.c.bf16 %v395_v54, %v395_v54  ;;  %v473_v59 = vpack.c.bf16 %v396_v57, %v396_v57 }
  0xae   :  { %v487_v62 = vsel %vm2549_vm0, %v472_v58, 0  ;;  %v490_v63 = vsel %vm2549_vm0, %v473_v59, 0  ;;  %vm2571_vm0 = vcmask 1039360  }
  0xaf   :  { %v1785_v1 = vpop.permute.xlu1 %1784  ;;  %501 = vmatpush.bf16.msra.mxu0 %v487_v62  ;;  %514 = vmatpush.bf16.msra.mxu1 %v490_v63  ;;  %vm2572_vm2 = vmmov %vm2571_vm0 }
  0xb0   :  { %v1787_v10 = vunpack.i.h.bf16 %v1785_v1  ;;  %v1780_v12 = vpop.permute.xlu0 %1779  ;;  %1426 = vmatmul.msk.bf16.vlgmr.msra.gmra.mxu3 %vm482_vm7, %v2173_v41  ;;  %v1786_v13 = vunpack.i.l.bf16 %v1785_v1 }
  0xb1   :  { %v1782_v14 = vunpack.i.h.bf16 %v1780_v12  ;;  %v1781_v15 = vunpack.i.l.bf16 %v1780_v12 }
  0xb2   :  { %v273_v21 = vsel %vm2571_vm0, %v1786_v13, %v1787_v10  ;;  %v272_v30 = vsel %vm2572_vm2, %v1717_v19, %v1786_v13  ;;  %vm2573_vm0 = vcmask 7168  }
  0xb3   :  { %v354_v7 = vsel %vm353_vm5, %v1712_v4, %v1781_v15  ;;  %v355_v17 = vsel %vm353_vm5, %v1781_v15, %v1782_v14  ;;  %v1607_v26 = vpack.c.bf16 %v273_v21, %v2010_v3  ;;  %v1595_v36 = vpack.c.bf16 %v272_v30, %v2008_v2  ;;  %vm2574_vm2 = vmmov %vm2573_vm0 }
  0xb4   :  { %v1592_v24 = vpack.c.bf16 %v354_v7, %v313_v20  ;;  %v1604_v27 = vpack.c.bf16 %v355_v17, %v314_v16  ;;  %v182_v3 = vsel %vm181_vm14, %v1747_v32, %v1791_v31 }
  0xb6   :  { %1593 = vmatpush.bf16.msk.msra.mxu0 %vm2093_vm9, %v1592_v24  ;;  %1605 = vmatpush.bf16.msk.msra.mxu1 %vm2106_vm11, %v1604_v27 }
  0xb7   :  { %v1800_v34 = vpop.permute.xlu1 %1799 }
  0xb8   :  { %v1795_v35 = vpop.permute.xlu0 %1794  ;;  %v1802_v44 = vunpack.i.h.bf16 %v1800_v34  ;;  %v1801_v56 = vunpack.i.l.bf16 %v1800_v34 }
  0xb9   :  { %v1797_v38 = vunpack.i.h.bf16 %v1795_v35  ;;  %v1796_v39 = vunpack.i.l.bf16 %v1795_v35 }
  0xba   :  { %1596 = vmatpush.bf16.msk.msra.mxu0 %vm2120_vm12, %v1595_v36  ;;  %1608 = vmatpush.bf16.msk.msra.mxu1 %vm2129_vm13, %v1607_v26  ;;  %v101_v48 = vsel %vm99_vm15, %v1802_v44, %v98_v6  ;;  %v100_v49 = vsel %vm99_vm15, %v1801_v56, %v1802_v44  ;;  %vm2575_vm12 = vcmask 908288   ;;  %vm2576_vm13 = vcmask 1043456  }
  0xbb   :  { %v223_v18 = vsel %vm2573_vm0, %v1757_v37, %v1796_v39  ;;  %v224_v42 = vsel %vm2574_vm2, %v1796_v39, %v1797_v38  ;;  %vm2577_vm0 = vmmov %vm2575_vm12 }
  0xbc   :  { %v1598_v43 = vpack.c.bf16 %v223_v18, %v182_v3  ;;  %v1610_v2 = vpack.c.bf16 %v224_v42, %v183_v40  ;;  %vm2578_vm2 = vmmov %vm2576_vm13 }
  0xbe   :  { %1599 = vmatpush.bf16.msk.msra.mxu0 %vm2149_vm8, %v1598_v43  ;;  %1611 = vmatpush.bf16.msk.msra.mxu1 %vm2158_vm10, %v1610_v2 }
  0xbf   :  { %v139_v11 = vpop.permute.xlu1 %138 }
  0xc0   :  { %v1805_v45 = vpop.permute.xlu0 %1804 }
  0xc1   :  { %v1807_v46 = vunpack.i.h.bf16 %v1805_v45  ;;  %v1806_v47 = vunpack.i.l.bf16 %v1805_v45 }
  0xc3   :  { %v142_v50 = vsel %vm140_vm4, %v1807_v46, %v139_v11  ;;  %v141_v51 = vsel %vm140_vm4, %v1806_v47, %v1807_v46 }
  0xc4   :  { %v1613_v52 = vpack.c.bf16 %v142_v50, %v101_v48  ;;  %v1601_v22 = vpack.c.bf16 %v141_v51, %v100_v49 }
  0xc6   :  { %1602 = vmatpush.bf16.msk.msra.mxu0 %vm2093_vm9, %v1601_v22  ;;  %1614 = vmatpush.bf16.msk.msra.mxu1 %vm2106_vm11, %v1613_v52 }
  0xc9   :  { %1423 = vmatmul.msk.bf16.vlgmr.msra.gmra.mxu0 %vm482_vm7, %v2173_v41  ;;  %1424 = vmatmul.msk.bf16.vlgmr.msra.gmra.mxu1 %vm482_vm7, %v2173_v41 }
  0xf1   :  { %v480_v59 = vpop.permute.xlu2 %479 }
 0x12c   :  { %v533_v53 = vpop.f32.mrf.mxu2 }
 0x12d   :  { %v534_v41 = vadd.f32 %v533_v53, %v480_v59 }
 0x12f   :  { %v552_v16 = vmul.f32 0.01, %v534_v41 }
 0x131   :  { %v2249_v7 = vmax.f32 %v534_v41, %v552_v16 }
 0x133   :  { %v546_v54 = vpop.f32.mrf.mxu3  ;;  %v1874_v24 = vpack.i.bf16 %v2249_v7, %v1956_v5 }
 0x134   :  { %v535_v57 = vpop.f32.mrf.mxu2  ;;  %v547_v14 = vadd.f32 %v546_v54, %v480_v59 }
 0x136   :  { %v553_v19 = vmul.f32 0.01, %v547_v14 }
 0x138   :  { %v2251_v17 = vmax.f32 %v547_v14, %v553_v19 }
 0x13a   :  { %v1844_v21 = vpack.i.bf16 %v2251_v17, %v2249_v7  ;;  %v1869_v8 = vpack.i.bf16 0.0, %v2251_v17 }
 0x13b   :  { %v548_v58 = vpop.f32.mrf.mxu3 }
 0x146   :  { %v507_v60 = vpop.f32.mrf.mxu0  ;;  %v520_v62 = vpop.f32.mrf.mxu1 }
 0x147   :  { %v508_v63 = vadd.f32 %v507_v60, %v480_v59  ;;  %v521_v1 = vadd.f32 %v520_v62, %v480_v59 }
 0x149   :  { %v550_v0 = vmul.f32 0.01, %v508_v63  ;;  %v551_v9 = vmul.f32 0.01, %v521_v1 }
 0x14b   :  { %v2236_v4 = vmax.f32 %v508_v63, %v550_v0  ;;  %v2243_v15 = vmax.f32 %v521_v1, %v551_v9 }
 0x14d   :  { %v1819_v10 = vpack.i.bf16 %v2236_v4, %v1956_v5  ;;  %v1829_v20 = vpack.i.bf16 0.0, %v2243_v15  ;;  %v1904_v27 = vpack.i.bf16 %v2243_v15, %v2236_v4 }
 0x14e   :  { %v509_v12 = vpop.f32.mrf.mxu0  ;;  %v522_v13 = vpop.f32.mrf.mxu1 }
 0x14f   :  { %1820 = vrot.lane.b32.xlu2 %v1819_v10, %s1957_s25  ;;  %1815 = vrot.lane.b32.xlu0 %v1819_v10, %s1958_s26 }
 0x150   :  { %1810 = vrot.lane.b32.xlu1 %v1819_v10, %s1959_s27 }
 0x157   :  { %1830 = vrot.lane.b32.xlu2 %v1829_v20, %s1959_s27  ;;  %1840 = vrot.lane.b32.xlu0 %v1829_v20, %s1957_s25 }
 0x158   :  { %1825 = vrot.lane.b32.xlu1 %v1819_v10, %s1960_s0 }
 0x15f   :  { %1835 = vrot.lane.b32.xlu2 %v1829_v20, %s1958_s26  ;;  %1845 = vrot.lane.b32.xlu0 %v1844_v21, %s1959_s27 }
 0x160   :  { %1855 = vrot.lane.b32.xlu1 %v1844_v21, %s1957_s25 }
 0x167   :  { %1850 = vrot.lane.b32.xlu2 %v1844_v21, %s1958_s26  ;;  %1860 = vrot.lane.b32.xlu0 %v1844_v21, %s1960_s0 }
 0x168   :  { %1870 = vrot.lane.b32.xlu1 %v1869_v8, %s1961_s28 }
 0x16f   :  { %1875 = vrot.lane.b32.xlu2 %v1874_v24, %s1962_s29  ;;  %1865 = vrot.lane.b32.xlu0 %v1874_v24, %s1961_s28 }
 0x170   :  { %1885 = vrot.lane.b32.xlu1 %v1874_v24, %s1964_s7 }
 0x177   :  { %1890 = vrot.lane.b32.xlu2 %v1869_v8, %s1964_s7  ;;  %1880 = vrot.lane.b32.xlu0 %v1869_v8, %s1962_s29 }
 0x178   :  { %634 = vrot.lane.b32.xlu1 %v2251_v17, %s1963_s30 }
 0x17f   :  { %1905 = vrot.lane.b32.xlu2 %v1904_v27, %s1961_s28  ;;  %1895 = vrot.lane.b32.xlu0 %v1874_v24, %s1963_s30 }
 0x180   :  { %1900 = vrot.lane.b32.xlu1 %v1829_v20, %s1960_s0 }
 0x187   :  { %1920 = vrot.lane.b32.xlu2 %v1819_v10, %s1963_s30  ;;  %1910 = vrot.lane.b32.xlu0 %v1904_v27, %s1962_s29 }
 0x188   :  { %1915 = vrot.lane.b32.xlu1 %v1904_v27, %s1964_s7 }
 0x18f   :  { %616 = vrot.lane.b32.xlu0 %v2243_v15, %s1963_s30 }
 0x1a9   :  { %v1821_v28 = vpop.permute.xlu2 %1820 }
 0x1aa   :  { %v1823_v45 = vunpack.i.h.bf16 %v1821_v28  ;;  %v1822_v41 = vunpack.i.l.bf16 %v1821_v28 }
 0x1b1   :  { %v1831_v30 = vpop.permute.xlu2 %1830 }
 0x1b2   :  { %v1833_v26 = vunpack.i.h.bf16 %v1831_v30  ;;  %v1832_v31 = vunpack.i.l.bf16 %v1831_v30 }
 0x1b4   :  { %v859_v32 = vsel %vm2575_vm12, %v1832_v31, %v1833_v26  ;;  %vm2579_vm12 = vmmov %vm2577_vm0 }
 0x1b5   :  { %v863_v34 = vsel %vm2067_vm3, %v859_v32, 0.0 }
 0x1b6   :  { %v940_v35 = vpack.c.bf16 %v863_v34, %v863_v34 }
 0x1b8   :  { %v956_v36 = vsel %vm2576_vm13, %v940_v35, 0  ;;  %vm2580_vm13 = vmmov %vm2577_vm0 }
 0x1b9   :  { %980 = vmatpush.bf16.msrb.mxu1 %v956_v36  ;;  %v1836_v40 = vpop.permute.xlu2 %1835 }
 0x1ba   :  { %v1838_v43 = vunpack.i.h.bf16 %v1836_v40  ;;  %v1837_v2 = vunpack.i.l.bf16 %v1836_v40 }
 0x1bc   :  { %v783_v50 = vsel %vm312_vm6, %v1837_v2, %v1838_v43 }
 0x1c1   :  { %v1816_v37 = vpop.permute.xlu0 %1815  ;;  %v1851_v53 = vpop.permute.xlu2 %1850 }
 0x1c2   :  { %v1811_v38 = vpop.permute.xlu1 %1810  ;;  %v1818_v44 = vunpack.i.h.bf16 %v1816_v37  ;;  %v1853_v9 = vunpack.i.h.bf16 %v1851_v53  ;;  %v1852_v10 = vunpack.i.l.bf16 %v1851_v53  ;;  %v1817_v14 = vunpack.i.l.bf16 %v1816_v37 }
 0x1c3   :  { %v1813_v39 = vunpack.i.h.bf16 %v1811_v38  ;;  %v1812_v57 = vunpack.i.l.bf16 %v1811_v38 }
 0x1c4   :  { %v782_v48 = vsel %vm312_vm6, %v1818_v44, %v1837_v2  ;;  %v802_v30 = vsel %vm312_vm6, %v1852_v10, %v1853_v9  ;;  %v803_v34 = vsel %vm312_vm6, %v1853_v9, %v1817_v14 }
 0x1c5   :  { %v858_v3 = vsel %vm2577_vm0, %v1813_v39, %v1832_v31  ;;  %vm2581_vm0 = vmmov %vm2578_vm2 }
 0x1c6   :  { %v862_v18 = vsel %vm2062_vm1, %v858_v3, 0.0 }
 0x1c7   :  { %v939_v42 = vpack.c.bf16 %v862_v18, %v862_v18 }
 0x1c9   :  { %v1841_v56 = vpop.permute.xlu0 %1840  ;;  %v953_v6 = vsel %vm2578_vm2, %v939_v42, 0  ;;  %vm2582_vm2 = vmmov %vm2581_vm0  ;;  %v1876_v35 = vpop.permute.xlu2 %1875 }
 0x1ca   :  { %v1843_v11 = vunpack.i.h.bf16 %v1841_v56  ;;  %v1842_v46 = vunpack.i.l.bf16 %v1841_v56  ;;  %v2289_v47 = vpop.permute.xlu1 %1825  ;;  %967 = vmatpush.bf16.msrb.mxu0 %v953_v6  ;;  %v1878_v43 = vunpack.i.h.bf16 %v1876_v35  ;;  %v1877_v2 = vunpack.i.l.bf16 %v1876_v35 }
 0x1cb   :  { %v1827_v26 = vunpack.i.l.bf16 %v2289_v47 }
 0x1cc   :  { %v822_v49 = vsel %vm353_vm5, %v1823_v45, %v1842_v46  ;;  %v823_v51 = vsel %vm353_vm5, %v1842_v46, %v1843_v11 }
 0x1cd   :  { %v1640_v52 = vpack.c.bf16 %v822_v49, %v782_v48  ;;  %v1652_v22 = vpack.c.bf16 %v823_v51, %v783_v50 }
 0x1cf   :  { %1641 = vmatpush.bf16.msk.msrb.mxu0 %vm2093_vm9, %v1640_v52  ;;  %1653 = vmatpush.bf16.msk.msrb.mxu1 %vm2106_vm11, %v1652_v22 }
 0x1d1   :  { %v1846_v54 = vpop.permute.xlu0 %1845  ;;  %v2342_v11 = vpop.permute.xlu2 %1890 }
 0x1d2   :  { %v1856_v58 = vpop.permute.xlu1 %1855  ;;  %v1848_v59 = vunpack.i.h.bf16 %v1846_v54  ;;  %v1847_v60 = vunpack.i.l.bf16 %v1846_v54 }
 0x1d3   :  { %v1858_v62 = vunpack.i.h.bf16 %v1856_v58  ;;  %v1857_v63 = vunpack.i.l.bf16 %v1856_v58 }
 0x1d4   :  { %v878_v0 = vsel %vm2579_vm12, %v1847_v60, %v1848_v59  ;;  %v879_v1 = vsel %vm2580_vm13, %v1848_v59, %v1812_v57  ;;  %vm2583_vm12 = vcmask 1039360   ;;  %v1892_v59 = vunpack.i.l.bf16 %v2342_v11 }
 0x1d5   :  { %v882_v12 = vsel %vm2062_vm1, %v878_v0, 0.0  ;;  %v883_v13 = vsel %vm2067_vm3, %v879_v1, 0.0  ;;  %v840_v8 = vsel %vm353_vm5, %v1857_v63, %v1858_v62  ;;  %v841_v24 = vsel %vm353_vm5, %v1858_v62, %v1822_v41  ;;  %vm2584_vm13 = vmmov %vm2583_vm12 }
 0x1d6   :  { %v941_v16 = vpack.c.bf16 %v882_v12, %v882_v12  ;;  %v942_v19 = vpack.c.bf16 %v883_v13, %v883_v13  ;;  %v1664_v36 = vpack.c.bf16 %v840_v8, %v802_v30  ;;  %v1676_v37 = vpack.c.bf16 %v841_v24, %v803_v34  ;;  %v886_v30 = vld [vmem:[%s2542_s3] sm:$0xf] }
 0x1d7   :  { %v1828_v0 = vunpack.i.h.bf16 %v2289_v47  ;;  %v1893_v34 = vunpack.i.h.bf16 %v2342_v11 }
 0x1d8   :  { %v959_v20 = vsel %vm2581_vm0, %v941_v16, 0  ;;  %v962_v21 = vsel %vm2582_vm2, %v942_v19, 0  ;;  %vm2585_vm0 = vmmov 1  }
 0x1d9   :  { %v1861_v27 = vpop.permute.xlu0 %1860  ;;  %993 = vmatpush.bf16.msrb.mxu2 %v959_v20  ;;  %1006 = vmatpush.bf16.msrb.mxu3 %v962_v21  ;;  %vm2323_vm2 = vmpackc.low %vm2062_vm1, %vm2585_vm0  ;;  %vm2590_vm1 = vcmask 7168   ;;  %v1906_v53 = vpop.permute.xlu2 %1905 }
 0x1da   :  { %v2311_v31 = vpop.permute.xlu1 %1870  ;;  %v1863_v28 = vunpack.i.h.bf16 %v1861_v27  ;;  %v1862_v32 = vunpack.i.l.bf16 %v1861_v27  ;;  %vm2330_vm6 = vmpackc.low %vm2067_vm3, %vm2585_vm0  ;;  %v714_v45 = vsel %vm2590_vm1, %v1877_v2, %v1878_v43  ;;  %v1908_v24 = vunpack.i.h.bf16 %v1906_v53 }
 0x1db   :  { %v1872_v48 = vunpack.i.l.bf16 %v2311_v31  ;;  %vm2591_vm3 = vmmov %vm2590_vm1  ;;  %v1873_v8 = vunpack.i.h.bf16 %v2311_v31  ;;  %v1907_v27 = vunpack.i.l.bf16 %v1906_v53 }
 0x1dc   :  { %v762_v38 = vsel %vm2583_vm12, %v1862_v32, %v1863_v28  ;;  %v763_v39 = vsel %vm2584_vm13, %v1863_v28, %v1827_v26  ;;  %vm2592_vm13 = vmmov %vm2583_vm12 }
 0x1dd   :  { %1665 = vmatpush.bf16.msk.msrb.mxu2 %vm2093_vm9, %v1664_v36  ;;  %1677 = vmatpush.bf16.msk.msrb.mxu3 %vm2106_vm11, %v1676_v37  ;;  %v1667_v18 = vpack.c.bf16 %v762_v38, %v2249_v7  ;;  %v1679_v42 = vpack.c.bf16 %v763_v39, %v2251_v17  ;;  %v943_v17 = vld [vmem:[%s2541_s4] sm:$0xff]  ;;  %v654_v36 = vsel %vm181_vm14, %v1873_v8, %v1907_v27  ;;  %vm2593_vm0 = vmmov %vm2590_vm1  ;;  %v1564_v8 = vld [vmem:[%s2543_s5 + $0x28] sm:$0xff] }
 0x1de   :  { %946 = vperm.xlu1 %1924, %v943_v17   ;;  %v655_v37 = vsel %vm181_vm14, %v1907_v27, %v1908_v24  ;;  %v1572_v24 = vld [vmem:[%s2543_s5 + $0x68] sm:$0xff]  ;;  %v1578_v27 = vld [vmem:[%s2543_s5 + $0x98] sm:$0xff] }
 0x1e1   :  { %v1866_v44 = vpop.permute.xlu0 %1865  ;;  %1668 = vmatpush.bf16.msk.msrb.mxu2 %vm2323_vm2, %v1667_v18  ;;  %1680 = vmatpush.bf16.msk.msrb.mxu3 %vm2330_vm6, %v1679_v42 }
 0x1e2   :  { %v1886_v29 = vpop.permute.xlu1 %1885  ;;  %v1868_v56 = vunpack.i.h.bf16 %v1866_v44  ;;  %v1867_v33 = vunpack.i.l.bf16 %v1866_v44 }
 0x1e3   :  { %v1888_v54 = vunpack.i.h.bf16 %v1886_v29  ;;  %v1887_v57 = vunpack.i.l.bf16 %v1886_v29 }
 0x1e4   :  { %v674_v6 = vsel %vm181_vm14, %v1867_v33, %v1868_v56  ;;  %v675_v51 = vsel %vm181_vm14, %v1868_v56, %v1872_v48 }
 0x1e5   :  { %v1670_v7 = vpack.c.bf16 %v714_v45, %v674_v6  ;;  %v598_v10 = vsel %vm99_vm15, %v1887_v57, %v1888_v54  ;;  %v599_v13 = vsel %vm99_vm15, %v1888_v54, %v1892_v59 }
 0x1e6   :  { %1091 = vrot.lane.b32.xlu1 %v1956_v5, %s1959_s27 }
 0x1e7   :  { %1671 = vmatpush.bf16.msk.msrb.mxu2 %vm2149_vm8, %v1670_v7 }
 0x1e9   :  { %v1881_v46 = vpop.permute.xlu0 %1880 }
 0x1ea   :  { %v635_v49 = vpop.permute.xlu1 %634  ;;  %v1882_v50 = vunpack.i.l.bf16 %v1881_v46  ;;  %v1883_v26 = vunpack.i.h.bf16 %v1881_v46 }
 0x1ec   :  { %v715_v52 = vsel %vm2591_vm3, %v1878_v43, %v1882_v50 }
 0x1ed   :  { %v1682_v22 = vpack.c.bf16 %v715_v52, %v675_v51 }
 0x1ef   :  { %1683 = vmatpush.bf16.msk.msrb.mxu3 %vm2158_vm10, %v1682_v22 }
 0x1f1   :  { %v1896_v58 = vpop.permute.xlu0 %1895 }
 0x1f2   :  { %v1901_v60 = vpop.permute.xlu1 %1900  ;;  %v1898_v62 = vunpack.i.h.bf16 %v1896_v58  ;;  %v1897_v63 = vunpack.i.l.bf16 %v1896_v58 }
 0x1f3   :  { %v1903_v1 = vunpack.i.h.bf16 %v1901_v60  ;;  %v1902_v9 = vunpack.i.l.bf16 %v1901_v60 }
 0x1f4   :  { %v636_v12 = vsel %vm140_vm4, %v1897_v63, %v1898_v62  ;;  %v637_v41 = vsel %vm140_vm4, %v1898_v62, %v635_v49 }
 0x1f5   :  { %v742_v14 = vsel %vm2583_vm12, %v1828_v0, %v1902_v9  ;;  %v743_v16 = vsel %vm2592_vm13, %v1902_v9, %v1903_v1  ;;  %v1673_v19 = vpack.c.bf16 %v636_v12, %v598_v10  ;;  %v1685_v20 = vpack.c.bf16 %v637_v41, %v599_v13  ;;  %v1590_v9 = vld [vmem:[%s2543_s5 + $0xf8] sm:$0xff]  ;;  %v1581_v10 = vld [vmem:[%s2543_s5 + $0xb0] sm:$0xff] }
 0x1f6   :  { %v1643_v21 = vpack.c.bf16 %v742_v14, %v2236_v4  ;;  %v1655_v47 = vpack.c.bf16 %v743_v16, %v2243_v15  ;;  %v1921_v4 = vpop.permute.xlu2 %1920  ;;  %v1589_v12 = vld [vmem:[%s2543_s5 + $0xf0] sm:$0xff]  ;;  %v1566_v13 = vld [vmem:[%s2543_s5 + $0x38] sm:$0xff]  ;;  %v1580_v14 = vld [vmem:[%s2543_s5 + $0xa8] sm:$0xff] }
 0x1f7   :  { %1674 = vmatpush.bf16.msk.msrb.mxu2 %vm2093_vm9, %v1673_v19  ;;  %1686 = vmatpush.bf16.msk.msrb.mxu3 %vm2106_vm11, %v1685_v20  ;;  %v1923_v38 = vunpack.i.h.bf16 %v1921_v4  ;;  %v1922_v39 = vunpack.i.l.bf16 %v1921_v4  ;;  %v1574_v41 = vld [vmem:[%s2543_s5 + $0x78] sm:$0xff]  ;;  %v1588_v16 = vld [vmem:[%s2543_s5 + $0xe8] sm:$0xff]  ;;  %v1565_v19 = vld [vmem:[%s2543_s5 + $0x30] sm:$0xff] }
 0x1f8   :  { %1644 = vmatpush.bf16.msk.msrb.mxu0 %vm2323_vm2, %v1643_v21  ;;  %1656 = vmatpush.bf16.msk.msrb.mxu1 %vm2330_vm6, %v1655_v47  ;;  %vm2594_vm2 = vmmov %vm2593_vm0  ;;  %v1573_v20 = vld [vmem:[%s2543_s5 + $0x70] sm:$0xff]  ;;  %v1579_v21 = vld [vmem:[%s2543_s5 + $0xa0] sm:$0xff] }
 0x1f9   :  { %v1911_v15 = vpop.permute.xlu0 %1910  ;;  %v618_v44 = vsel %vm140_vm4, %v1922_v39, %v1923_v38  ;;  %v1587_v47 = vld [vmem:[%s2543_s5 + $0xe0] sm:$0xff] }
 0x1fa   :  { %v1916_v31 = vpop.permute.xlu1 %1915  ;;  %v1913_v28 = vunpack.i.h.bf16 %v1911_v15  ;;  %v1912_v32 = vunpack.i.l.bf16 %v1911_v15  ;;  %1429 = vmatmul.msk.bf16.vlgmr.msrb.gmra.mxu2 %vm482_vm7, %v886_v30  ;;  %1430 = vmatmul.msk.bf16.vlgmr.msrb.gmra.mxu3 %vm482_vm7, %v886_v30  ;;  %v1563_v4 = vld [vmem:[%s2543_s5 + $0x20] sm:$0xff] }
 0x1fb   :  { %v1917_v35 = vunpack.i.l.bf16 %v1916_v31  ;;  %v1918_v43 = vunpack.i.h.bf16 %v1916_v31  ;;  %1404 = vmatpush.bf16.msra.mxu3 %v1590_v9  ;;  %v1571_v15 = vld [vmem:[%s2543_s5 + $0x60] sm:$0xff]  ;;  %v1585_v31 = vld [vmem:[%s2543_s5 + $0xd0] sm:$0xff] }
 0x1fc   :  { %v694_v40 = vsel %vm2593_vm0, %v1883_v26, %v1912_v32  ;;  %v695_v3 = vsel %vm2594_vm2, %v1912_v32, %v1913_v28  ;;  %v1577_v26 = vld [vmem:[%s2543_s5 + $0x90] sm:$0xff]  ;;  %v1562_v28 = vld [vmem:[%s2543_s5 + $0x18] sm:$0xff]  ;;  %v1583_v39 = vld [vmem:[%s2543_s5 + $0xc0] sm:$0xff] }
 0x1fd   :  { %v1646_v18 = vpack.c.bf16 %v694_v40, %v654_v36  ;;  %v1658_v42 = vpack.c.bf16 %v695_v3, %v655_v37  ;;  %v578_v2 = vsel %vm99_vm15, %v1893_v34, %v1917_v35  ;;  %v579_v33 = vsel %vm99_vm15, %v1917_v35, %v1918_v43  ;;  %v1570_v32 = vld [vmem:[%s2543_s5 + $0x58] sm:$0xff]  ;;  %v1576_v34 = vld [vmem:[%s2543_s5 + $0x88] sm:$0xff]  ;;  %v1561_v36 = vld [vmem:[%s2543_s5 + $0x10] sm:$0xff] }
 0x1fe   :  { %v1649_v56 = vpack.c.bf16 %v618_v44, %v578_v2  ;;  %v1584_v35 = vld [vmem:[%s2543_s5 + $0xc8] sm:$0xff]  ;;  %v1569_v37 = vld [vmem:[%s2543_s5 + $0x50] sm:$0xff]  ;;  %v1559_v43 = vld [vmem:[%s2543_s5] sm:$0xff] }
 0x1ff   :  { %1647 = vmatpush.bf16.msk.msrb.mxu0 %vm2149_vm8, %v1646_v18  ;;  %1659 = vmatpush.bf16.msk.msrb.mxu1 %vm2158_vm10, %v1658_v42  ;;  %v1560_v40 = vld [vmem:[%s2543_s5 + $0x8] sm:$0xff]  ;;  %v1567_v2 = vld [vmem:[%s2543_s5 + $0x40] sm:$0xff]  ;;  %vm2595_vm8 = vmmov %vm2583_vm12  ;;  %vm2597_vm10 = vcmask 908288  }
 0x200   :  { %1405 = vmatpush.bf16.msra.mxu3 %v1589_v12  ;;  %v1568_v3 = vld [vmem:[%s2543_s5 + $0x48] sm:$0xff]  ;;  %vm2599_vm14 = vmmov %vm2595_vm8 }
 0x201   :  { %v617_v29 = vpop.permute.xlu0 %616  ;;  %vm2600_vm15 = vmmov %vm2595_vm8 }
 0x202   :  { %v619_v6 = vsel %vm140_vm4, %v1923_v38, %v617_v29  ;;  %v1575_v38 = vld [vmem:[%s2543_s5 + $0x80] sm:$0xff]  ;;  %vm2601_vm4 = vmmov %vm2597_vm10 }
 0x203   :  { %v1661_v45 = vpack.c.bf16 %v619_v6, %v579_v33  ;;  %1650 = vmatpush.bf16.msk.msrb.mxu0 %vm2093_vm9, %v1649_v56  ;;  %vm2596_vm9 = vmmov %vm2595_vm8 }
 0x204   :  { %1406 = vmatpush.bf16.msra.mxu3 %v1588_v16 }
 0x205   :  { %1662 = vmatpush.bf16.msk.msrb.mxu1 %vm2106_vm11, %v1661_v45  ;;  %vm2598_vm11 = vmmov %vm2597_vm10 }
 0x206   :  { %1427 = vmatmul.msk.bf16.vlgmr.msrb.gmra.mxu0 %vm482_vm7, %v886_v30 }
 0x207   :  { %1365 = vmatpush.bf16.msra.mxu0 %v1566_v13 }
 0x208   :  { %1428 = vmatmul.msk.bf16.vlgmr.msrb.gmra.mxu1 %vm482_vm7, %v886_v30  ;;  %1407 = vmatpush.bf16.msra.mxu3 %v1587_v47  ;;  %v1586_v30 = vld [vmem:[%s2543_s5 + $0xd8] sm:$0xff]  ;;  %vm2602_vm7 = vmmov %vm2601_vm4 }
 0x209   :  { %1378 = vmatpush.bf16.msra.mxu1 %v1574_v41 }
 0x20b   :  { %1366 = vmatpush.bf16.msra.mxu0 %v1565_v19 }
 0x20c   :  { %1408 = vmatpush.bf16.msra.mxu3 %v1586_v30 }
 0x20d   :  { %1379 = vmatpush.bf16.msra.mxu1 %v1573_v20 }
 0x20f   :  { %1367 = vmatpush.bf16.msra.mxu0 %v1564_v8 }
 0x210   :  { %1409 = vmatpush.bf16.msra.mxu3 %v1585_v31 }
 0x211   :  { %1380 = vmatpush.bf16.msra.mxu1 %v1572_v24 }
 0x213   :  { %1368 = vmatpush.bf16.msra.mxu0 %v1563_v4 }
 0x214   :  { %1410 = vmatpush.bf16.msra.mxu3 %v1584_v35 }
 0x215   :  { %1381 = vmatpush.bf16.msra.mxu1 %v1571_v15 }
 0x217   :  { %1369 = vmatpush.bf16.msra.mxu0 %v1562_v28 }
 0x218   :  { %1411 = vmatpush.bf16.msra.mxu3 %v1583_v39 }
 0x219   :  { %1382 = vmatpush.bf16.msra.mxu1 %v1570_v32 }
 0x21b   :  { %1370 = vmatpush.bf16.msra.mxu0 %v1561_v36 }
 0x21d   :  { %1383 = vmatpush.bf16.msra.mxu1 %v1569_v37 }
 0x21f   :  { %1371 = vmatpush.bf16.msra.mxu0 %v1560_v40 }
 0x221   :  { %1384 = vmatpush.bf16.msra.mxu1 %v1568_v3 }
 0x223   :  { %1372 = vmatpush.bf16.msra.mxu0 %v1559_v43 }
 0x225   :  { %1385 = vmatpush.bf16.msra.mxu1 %v1567_v2 }
 0x250   :  { %v947_v23 = vpop.permute.xlu1 %946 }
 0x258   :  { %v1092_v42 = vpop.permute.xlu1 %1091 }
 0x27d   :  { %v999_v25 = vpop.f32.mrf.mxu2  ;;  %v1012_v11 = vpop.f32.mrf.mxu3 }
 0x27e   :  { %v1000_v7 = vadd.f32 %v999_v25, %v947_v23  ;;  %v1013_v17 = vadd.f32 %v1012_v11, %v947_v23 }
 0x280   :  { %v1018_v46 = vmul.f32 0.01, %v1000_v7  ;;  %v1019_v48 = vmul.f32 0.01, %v1013_v17 }
 0x282   :  { %v2399_v49 = vmax.f32 %v1000_v7, %v1018_v46  ;;  %v2401_v50 = vmax.f32 %v1013_v17, %v1019_v48 }
 0x283   :  { %v973_v55 = vpop.f32.mrf.mxu0 }
 0x284   :  { %v974_v51 = vadd.f32 %v973_v55, %v947_v23  ;;  %v1940_v61 = vpack.i.bf16 %v2401_v50, %v2399_v49 }
 0x285   :  { %v986_v52 = vpop.f32.mrf.mxu1  ;;  %v1001_v22 = vpop.f32.mrf.mxu2 }
 0x286   :  { %v1016_v53 = vmul.f32 0.01, %v974_v51  ;;  %v987_v54 = vadd.f32 %v986_v52, %v947_v23  ;;  %1941 = vrot.lane.b32.xlu1 %v1940_v61, %s1957_s25  ;;  %v1014_v57 = vpop.f32.mrf.mxu3 }
 0x288   :  { %v2406_v58 = vmax.f32 %v974_v51, %v1016_v53  ;;  %v1017_v59 = vmul.f32 0.01, %v987_v54 }
 0x28a   :  { %v2408_v60 = vmax.f32 %v987_v54, %v1017_v59  ;;  %v1930_v62 = vpack.i.bf16 %v2406_v58, %v1956_v5  ;;  %v1582_v5 = vld [vmem:[%s2543_s5 + $0xb8] sm:$0xff] }
 0x28b   :  { %v975_v63 = vpop.f32.mrf.mxu0  ;;  %1391 = vmatpush.bf16.msra.mxu2 %v1582_v5 }
 0x28c   :  { %1931 = vrot.lane.b32.xlu2 %v1930_v62, %s1957_s25  ;;  %1926 = vrot.lane.b32.xlu0 %v1930_v62, %s1960_s0  ;;  %v1950_v0 = vpack.i.bf16 %v2408_v60, %v2406_v58 }
 0x28d   :  { %v988_v1 = vpop.f32.mrf.mxu1 }
 0x28e   :  { %1951 = vrot.lane.b32.xlu1 %v1950_v0, %s1959_s27 }
 0x28f   :  { %1392 = vmatpush.bf16.msra.mxu2 %v1581_v10 }
 0x293   :  { %1393 = vmatpush.bf16.msra.mxu2 %v1580_v14 }
 0x294   :  { %1946 = vrot.lane.b32.xlu0 %v1940_v61, %s1959_s27  ;;  %1936 = vrot.lane.b32.xlu2 %v1940_v61, %s1960_s0 }
 0x297   :  { %1394 = vmatpush.bf16.msra.mxu2 %v1579_v21 }
 0x29b   :  { %1395 = vmatpush.bf16.msra.mxu2 %v1578_v27 }
 0x29c   :  { %1063 = vrot.lane.b32.xlu0 %v2408_v60, %s1957_s25  ;;  %1041 = vrot.lane.b32.xlu2 %v2408_v60, %s1960_s0 }
 0x29f   :  { %1396 = vmatpush.bf16.msra.mxu2 %v1577_v26 }
 0x2a3   :  { %1397 = vmatpush.bf16.msra.mxu2 %v1576_v34 }
 0x2a7   :  { %1398 = vmatpush.bf16.msra.mxu2 %v1575_v38 }
 0x2e6   :  { %v1932_v18 = vpop.permute.xlu2 %1931 }
 0x2e7   :  { %v1933_v46 = vunpack.i.l.bf16 %v1932_v18  ;;  %v1934_v12 = vunpack.i.h.bf16 %v1932_v18 }
 0x2ee   :  { %v1937_v44 = vpop.permute.xlu2 %1936 }
 0x2ef   :  { %v1939_v33 = vunpack.i.h.bf16 %v1937_v44  ;;  %v1938_v6 = vunpack.i.l.bf16 %v1937_v44 }
 0x2f1   :  { %v1051_v7 = vsel %vm2596_vm9, %v1938_v6, %v1939_v33 }
 0x2f2   :  { %v1059_v55 = vmax.f32 %v2399_v49, %v1051_v7 }
 0x2f6   :  { %v1042_v54 = vpop.permute.xlu2 %1041 }
 0x2f7   :  { %v1050_v5 = vsel %vm2599_vm14, %v1042_v54, %v1938_v6 }
 0x2f8   :  { %v1942_v29 = vpop.permute.xlu1 %1941  ;;  %v1058_v14 = vmax.f32 %v2408_v60, %v1050_v5 }
 0x2f9   :  { %v1944_v23 = vunpack.i.h.bf16 %v1942_v29  ;;  %v1943_v25 = vunpack.i.l.bf16 %v1942_v29 }
 0x2fb   :  { %v1073_v48 = vsel %vm353_vm5, %v1943_v25, %v1944_v23  ;;  %v1074_v61 = vsel %vm353_vm5, %v1944_v23, %v1933_v46 }
 0x2fc   :  { %v1081_v57 = vmax.f32 %v1059_v55, %v1073_v48 }
 0x2fe   :  { %v1927_v56 = vpop.permute.xlu0 %1926 }
 0x2ff   :  { %v1928_v45 = vunpack.i.l.bf16 %v1927_v56  ;;  %v1929_v52 = vunpack.i.h.bf16 %v1927_v56 }
 0x300   :  { %v1952_v0 = vpop.permute.xlu1 %1951 }
 0x301   :  { %v1052_v11 = vsel %vm2595_vm8, %v1939_v33, %v1928_v45  ;;  %v1049_v49 = vsel %vm2600_vm15, %v1929_v52, %v1042_v54  ;;  %v1954_v13 = vunpack.i.h.bf16 %v1952_v0  ;;  %v1953_v41 = vunpack.i.l.bf16 %v1952_v0 }
 0x302   :  { %v1060_v17 = vmax.f32 %v2401_v50, %v1052_v11  ;;  %v1057_v19 = vmax.f32 %v2406_v58, %v1049_v49 }
 0x303   :  { %v1093_v24 = vsel %vm2601_vm4, %v1953_v41, %v1954_v13 }
 0x304   :  { %v1082_v59 = vmax.f32 %v1060_v17, %v1074_v61 }
 0x306   :  { %v1947_v51 = vpop.permute.xlu0 %1946 }
 0x307   :  { %v1949_v22 = vunpack.i.h.bf16 %v1947_v51  ;;  %v1948_v53 = vunpack.i.l.bf16 %v1947_v51 }
 0x309   :  { %v1096_v62 = vsel %vm2597_vm10, %v1949_v22, %v1092_v42  ;;  %v1095_v63 = vsel %vm2598_vm11, %v1948_v53, %v1949_v22  ;;  %v1094_v27 = vsel %vm2602_vm7, %v1954_v13, %v1948_v53 }
 0x30a   :  { %v1103_v50 = vmax.f32 %v1081_v57, %v1095_v63  ;;  %v1104_v1 = vmax.f32 %v1082_v59, %v1096_v62 }
 0x30c   :  { %v1107_v9 = vpack.c.bf16 %v1103_v50, %v1103_v50  ;;  %v1108_v10 = vpack.c.bf16 %v1104_v1, %v1104_v1 }
 0x30e   :  { %v1064_v16 = vpop.permute.xlu0 %1063  ;;  %1399 = vmatmul.bf16.vlgmr.msra.gmra.mxu2 %v1107_v9  ;;  %1412 = vmatmul.bf16.vlgmr.msra.gmra.mxu3 %v1108_v10 }
 0x30f   :  { %v1071_v20 = vsel %vm353_vm5, %v1934_v12, %v1064_v16  ;;  %v1072_v21 = vsel %vm353_vm5, %v1064_v16, %v1943_v25 }
 0x310   :  { %v1079_v47 = vmax.f32 %v1057_v19, %v1071_v20  ;;  %v1080_v8 = vmax.f32 %v1058_v14, %v1072_v21 }
 0x312   :  { %v1101_v30 = vmax.f32 %v1079_v47, %v1093_v24  ;;  %v1102_v4 = vmax.f32 %v1080_v8, %v1094_v27 }
 0x314   :  { %v1105_v15 = vpack.c.bf16 %v1101_v30, %v1101_v30  ;;  %v1106_v26 = vpack.c.bf16 %v1102_v4, %v1102_v4 }
 0x316   :  { %1373 = vmatmul.bf16.vlgmr.msra.gmra.mxu0 %v1105_v15  ;;  %1386 = vmatmul.bf16.vlgmr.msra.gmra.mxu1 %v1106_v26 }
 0x391   :  { %v1400_v60 = vpop.f32.mrf.mxu2  ;;  %v1413_v58 = vpop.f32.mrf.mxu3 }
 0x393   :  { %v1374_v31 = vpop.f32.mrf.mxu0  ;;  %v1387_v28 = vpop.f32.mrf.mxu1 }
 0x394   :  { %v1388_v32 = vadd.f32 %v1387_v28, %v1374_v31 }
 0x396   :  { %v1401_v34 = vadd.f32 %v1400_v60, %v1388_v32 }
 0x398   :  { %v1414_v35 = vadd.f32 %v1413_v58, %v1401_v34 }
 0x399   :  { %v1402_v36 = vpop.f32.mrf.mxu2  ;;  %v1415_v37 = vpop.f32.mrf.mxu3 }
 0x39a   :  { %1417 = vst [vmem:[%s2544_s6] sm:$0xff] %v1414_v35 }
 0x39b   :  { %v1376_v38 = vpop.f32.mrf.mxu0  ;;  %v1389_v39 = vpop.f32.mrf.mxu1 }

</bundles_post_ra>
